<compile_context>
chip_gen: v7x
topology: tpu7x:2x2x1
jax: 0.10.0
libtpu: 0.0.40
codegen_flags: <defaults>
</compile_context>

<pallas_src>
import numpy as np
import jax
import jax.numpy as jnp
from jax.experimental import pallas as pl
from jax.experimental.pallas import tpu as pltpu

EPS = 1e-5
_LANE = 128
_W_OFF = 8          # sublane-aligned interior column offset in the mid scratch


def _round_up(v, m):
    return ((v + m - 1) // m) * m


def _vmem_limit_bytes():
    """Generation-aware VMEM limit (~3/4 of physical, capped at 100 MiB)."""
    try:
        cap = int(pltpu.get_tpu_info().vmem_capacity_bytes)
    except Exception:
        cap = 64 * 1024 * 1024
    return min((cap * 3) // 4, 100 * 1024 * 1024)


def _pick_strip(N, Ho, Wo, Cin, Cmid_p, Cout_p, budget):
    """Largest divisor TH of Ho whose per-step working set fits the budget."""
    lane = lambda c: _round_up(max(c, 1), _LANE)
    wbytes = 2 * (9 * Cin * Cmid_p + 9 * Cmid_p * Cout_p) + 8 * (Cmid_p + Cout_p)
    avail = max(budget - 2 * wbytes, budget // 4)

    def strip_bytes(th):
        inp = 2 * 4 * (th + 4) * 4 * (Wo + 2) * lane(Cin)         # dbl-buffered in
        out = 2 * 4 * th * Wo * Cout_p                            # dbl-buffered out
        mid = 2 * (th + 2) * (Wo + 2 * _W_OFF) * Cmid_p           # bf16 scratch
        xp = 2 * (th + 4) * (Wo + 2) * lane(Cin)                  # bf16 pooled
        cols = 2 * max((th + 2) * Wo * 3 * lane(Cin), th * Wo * 3 * Cmid_p)
        acc = 4 * (th + 2) * Wo * max(Cmid_p, Cout_p)
        return inp + out + mid + xp + cols + acc

    divisors = [d for d in range(1, Ho + 1) if Ho % d == 0]
    th = 1
    for d in divisors:
        if strip_bytes(d) <= avail:
            th = d
    # keep >= 2 grid steps when possible so both v7x TensorCores have work
    if N * (Ho // th) < 2 and Ho > 1:
        smaller = [d for d in divisors if d < Ho]
        if smaller:
            th = smaller[-1]
    return th, Ho // th


# ---------------------------------------------------------------------------
# fused kernel: 2x2 maxpool -> (conv3x3 + BN + ReLU) x 2 over one row strip
# ---------------------------------------------------------------------------
def _make_kernel(TH, Wo, Cin, Cmid_p, Cout_p, Ho, n_strips):
    def kernel(x_ref, w1_ref, s1_ref, b1_ref, w2_ref, s2_ref, b2_ref,
               out_ref, mid_ref):
        i = pl.program_id(0)
        s = i % n_strips                 # strip index inside the sample
        r0 = s * TH                      # first output (= pooled) row, global

        # ---- fused 2x2/2 max-pool: 4 taps are outer-dim slabs, C stays lanes
        xb = x_ref[0]                                     # (TH+4, 4, Wo+2, Cin)
        xp = jnp.maximum(jnp.maximum(xb[:, 0], xb[:, 1]),
                         jnp.maximum(xb[:, 2], xb[:, 3]))  # (TH+4, Wo+2, Cin)
        xp = xp.astype(jnp.bfloat16)     # bf16 MXU operands; W pad + halo baked in

        # ---- conv1 (3x3 SAME) + BN + ReLU over TH+2 rows (1-row halo for conv2)
        M1 = (TH + 2) * Wo
        acc1 = jnp.zeros((M1, Cmid_p), jnp.float32)
        for dy in range(3):              # 3 deep-K dots, no (M, 9C) staging buffer
            cols = jnp.concatenate(
                [xp[dy:dy + TH + 2, dx:dx + Wo, :] for dx in range(3)],
                axis=-1).reshape(M1, 3 * Cin)
            acc1 += jnp.dot(cols, w1_ref[dy], preferred_element_type=jnp.float32)
        y1 = jnp.maximum(acc1 * s1_ref[...] + b1_ref[...], 0.0)
        y1 = y1.reshape(TH + 2, Wo, Cmid_p)

        # rows outside the image are conv2's ZERO padding, not conv1 outputs
        row_g = r0 - 1 + jax.lax.broadcasted_iota(jnp.int32, (TH + 2, 1, 1), 0)
        y1 = jnp.where((row_g >= 0) & (row_g < Ho), y1, 0.0)

        # stage mid activations (bf16) in a column-padded scratch; interior at a
        # sublane-aligned offset so the big store is not masked/unaligned
        zc = jnp.zeros((TH + 2, 1, Cmid_p), jnp.bfloat16)
        mid_ref[:, _W_OFF - 1:_W_OFF, :] = zc
        mid_ref[:, _W_OFF + Wo:_W_OFF + Wo + 1, :] = zc
        mid_ref[:, _W_OFF:_W_OFF + Wo, :] = y1.astype(jnp.bfloat16)

        # ---- conv2 (3x3 SAME) + BN + ReLU over the TH output rows
        M2 = TH * Wo
        acc2 = jnp.zeros((M2, Cout_p), jnp.float32)
        for dy in range(3):
            cols = jnp.concatenate(
                [mid_ref[dy:dy + TH, _W_OFF - 1 + dx:_W_OFF - 1 + dx + Wo, :]
                 for dx in range(3)],
                axis=-1).reshape(M2, 3 * Cmid_p)
            acc2 += jnp.dot(cols, w2_ref[dy], preferred_element_type=jnp.float32)
        y2 = jnp.maximum(acc2 * s2_ref[...] + b2_ref[...], 0.0)

        out_ref[0] = y2.reshape(TH, Wo, Cout_p)   # lane-dense (Cout_p % 128 == 0)
    return kernel


def down_pallas(xs, w1, s1, b1, w2, s2, b2, *, TH, Wo, Ho, n_strips,
                Cin, Cmid_p, Cout_p):
    NS = xs.shape[0]
    kernel = _make_kernel(TH, Wo, Cin, Cmid_p, Cout_p, Ho, n_strips)
    return pl.pallas_call(
        kernel,
        out_shape=jax.ShapeDtypeStruct((NS, TH, Wo, Cout_p), jnp.float32),
        grid=(NS,),
        in_specs=[
            pl.BlockSpec((1, TH + 4, 4, Wo + 2, Cin), lambda i: (i, 0, 0, 0, 0)),
            pl.BlockSpec((3, 3 * Cin, Cmid_p), lambda i: (0, 0, 0)),
            pl.BlockSpec((1, Cmid_p), lambda i: (0, 0)),
            pl.BlockSpec((1, Cmid_p), lambda i: (0, 0)),
            pl.BlockSpec((3, 3 * Cmid_p, Cout_p), lambda i: (0, 0, 0)),
            pl.BlockSpec((1, Cout_p), lambda i: (0, 0)),
            pl.BlockSpec((1, Cout_p), lambda i: (0, 0)),
        ],
        out_specs=pl.BlockSpec((1, TH, Wo, Cout_p), lambda i: (i, 0, 0, 0)),
        scratch_shapes=[
            pltpu.VMEM((TH + 2, Wo + 2 * _W_OFF, Cmid_p), jnp.bfloat16),
        ],
        compiler_params=pltpu.CompilerParams(
            dimension_semantics=("parallel",),      # megacore / v7x 2-TC sharding
            vmem_limit_bytes=_vmem_limit_bytes(),
        ),
    )(xs, w1, s1, b1, w2, s2, b2)


# ---------------------------------------------------------------------------
# parameter init (deterministic) + BN folding + forward glue
# ---------------------------------------------------------------------------
def init_down_params(key, in_channels, out_channels):
    mid = out_channels  # DoubleConv default: mid_channels = out_channels
    k1, k2 = jax.random.split(key, 2)

    def conv_init(k, cout, cin):
        bound = 1.0 / np.sqrt(cin * 9)
        kw, kb = jax.random.split(k)
        w = jax.random.uniform(kw, (cout, cin, 3, 3), jnp.float32, -bound, bound)
        b = jax.random.uniform(kb, (cout,), jnp.float32, -bound, bound)
        return w, b

    w1, b1 = conv_init(k1, mid, in_channels)
    w2, b2 = conv_init(k2, out_channels, mid)

    # BatchNorm in eval mode (running statistics) - deterministic, non-trivial
    def bn(c):
        i = jnp.arange(c, dtype=jnp.float32)
        return 1.0 + 0.1 * i, 0.05 * i, 0.01 * i, 1.0 + 0.2 * i

    g1, be1, m1, v1 = bn(mid)
    g2, be2, m2, v2 = bn(out_channels)
    return dict(w1=w1, b1=b1, g1=g1, be1=be1, m1=m1, v1=v1,
                w2=w2, b2=b2, g2=g2, be2=be2, m2=m2, v2=v2)


def _fold_bn(w, b, gamma, beta, mean, var, cin_pad, cout_pad):
    """conv (Cout,Cin,3,3) -> per-dy im2col slabs (3, 3*cin_pad, cout_pad) bf16;
    conv bias + eval-mode BN -> per-channel f32 scale/bias (padded with 1/0)."""
    cout, cin = w.shape[0], w.shape[1]
    scale = gamma / jnp.sqrt(var + EPS)
    bias = beta + (b - mean) * scale
    wt = jnp.transpose(w, (2, 3, 1, 0))                      # (ky, kx, cin, cout)
    wt = jnp.pad(wt, ((0, 0), (0, 0), (0, cin_pad - cin), (0, cout_pad - cout)))
    wk = wt.reshape(3, 3 * cin_pad, cout_pad).astype(jnp.bfloat16)
    scale = jnp.pad(scale, (0, cout_pad - cout),
                    constant_values=1.0)[None, :].astype(jnp.float32)
    bias = jnp.pad(bias, (0, cout_pad - cout))[None, :].astype(jnp.float32)
    return wk, scale, bias


def down_forward(params, x):
    """x: (N, Cin, H, W) NCHW -> (N, Cout, H//2, W//2) NCHW."""
    N, Cin, H, W = x.shape
    Ho, Wo = H // 2, W // 2
    Cmid = params['w1'].shape[0]
    Cout = params['w2'].shape[0]
    Cmid_p = _round_up(Cmid, _LANE)
    Cout_p = _round_up(Cout, _LANE)

    w1, s1, b1 = _fold_bn(params['w1'], params['b1'], params['g1'],
                          params['be1'], params['m1'], params['v1'],
                          cin_pad=Cin, cout_pad=Cmid_p)
    w2, s2, b2 = _fold_bn(params['w2'], params['b2'], params['g2'],
                          params['be2'], params['m2'], params['v2'],
                          cin_pad=Cmid_p, cout_pad=Cout_p)

    # NCHW -> (row-pair, 4 pool taps, col-pair, C), with 2 pooled halo rows and
    # 1 pooled zero-pad column per side baked into the layout (all zeros).
    xh = jnp.transpose(x[:, :, :2 * Ho, :2 * Wo], (0, 2, 3, 1))     # NHWC
    xh = jnp.pad(xh, ((0, 0), (4, 4), (2, 2), (0, 0)))
    xh = xh.reshape(N, Ho + 4, 2, Wo + 2, 2, Cin)
    xh = jnp.transpose(xh, (0, 1, 2, 4, 3, 5)).reshape(N, Ho + 4, 4, Wo + 2, Cin)

    TH, n_strips = _pick_strip(N, Ho, Wo, Cin, Cmid_p, Cout_p, _vmem_limit_bytes())
    xs = jnp.stack([xh[:, s * TH:s * TH + TH + 4] for s in range(n_strips)],
                   axis=1)
    xs = xs.reshape(N * n_strips, TH + 4, 4, Wo + 2, Cin)

    y = down_pallas(xs, w1, s1, b1, w2, s2, b2,
                    TH=TH, Wo=Wo, Ho=Ho, n_strips=n_strips,
                    Cin=Cin, Cmid_p=Cmid_p, Cout_p=Cout_p)
    y = y.reshape(N, Ho, Wo, Cout_p)[..., :Cout]
    return jnp.transpose(y, (0, 3, 1, 2))                           # back to NCHW


# pure-JAX reference (correctness check only)
def down_forward_ref(params, x):
    N, C, H, W = x.shape
    Ho, Wo = H // 2, W // 2
    xp = x[:, :, :2 * Ho, :2 * Wo].reshape(N, C, Ho, 2, Wo, 2).max(axis=(3, 5))

    def block(x, w, b, g, be, m, v):
        y = jax.lax.conv_general_dilated(
            x, w, (1, 1), 'SAME',
            dimension_numbers=('NCHW', 'OIHW', 'NCHW')) + b[None, :, None, None]
        y = (y - m[None, :, None, None]) / jnp.sqrt(v[None, :, None, None] + EPS)
        y = y * g[None, :, None, None] + be[None, :, None, None]
        return jnp.maximum(y, 0.0)

    y = block(xp, params['w1'], params['b1'], params['g1'],
              params['be1'], params['m1'], params['v1'])
    y = block(y, params['w2'], params['b2'], params['g2'],
              params['be2'], params['m2'], params['v2'])
    return y


if __name__ == "__main__":
    key = jax.random.PRNGKey(0)
    k_x, k_p = jax.random.split(key)

    N, in_channels, out_channels, H, W = 2, 4, 8, 16, 16
    x = jax.random.normal(k_x, (N, in_channels, H, W), jnp.float32)
    params = init_down_params(k_p, in_channels, out_channels)

    y = jax.block_until_ready(down_forward(params, x))
    y_ref = jax.block_until_ready(down_forward_ref(params, x))

    assert y.shape == (N, out_channels, H // 2, W // 2)
    # bf16 MXU operands -> loosened tolerance vs. the f32 reference
    np.testing.assert_allclose(np.asarray(y), np.asarray(y_ref),
                               rtol=5e-2, atol=5e-2)
    print("KERNEL_OK")
</pallas_src>

<mosaic_0001>
module attributes {stable_mosaic.version = 11 : i64} {
  func.func @kernel(%arg0: i32, %arg1: memref<1x12x4x10x4xf32, #tpu.memory_space<vmem>>, %arg2: memref<3x12x128xbf16, #tpu.memory_space<vmem>>, %arg3: memref<1x128xf32, #tpu.memory_space<vmem>>, %arg4: memref<1x128xf32, #tpu.memory_space<vmem>>, %arg5: memref<3x384x128xbf16, #tpu.memory_space<vmem>>, %arg6: memref<1x128xf32, #tpu.memory_space<vmem>>, %arg7: memref<1x128xf32, #tpu.memory_space<vmem>>, %arg8: memref<1x8x8x128xf32, #tpu.memory_space<vmem>>, %arg9: memref<10x24x128xbf16, #tpu.memory_space<vmem>>) attributes {dimension_semantics = [#tpu.dimension_semantics<parallel>], iteration_bounds = array<i64: 2>, scalar_prefetch = 0 : i64, scratch_operands = 1 : i64, tpu.core_type = #tpu.core_type<tc>, window_params = [{transform_indices = @transform_0, window_bounds = array<i64: 1, 12, 4, 10, 4>}, {pipeline_mode = #tpu.pipeline_mode<synchronous>, transform_indices = @transform_1, window_bounds = array<i64: 3, 12, 128>}, {pipeline_mode = #tpu.pipeline_mode<synchronous>, transform_indices = @transform_2, window_bounds = array<i64: 1, 128>}, {pipeline_mode = #tpu.pipeline_mode<synchronous>, transform_indices = @transform_3, window_bounds = array<i64: 1, 128>}, {pipeline_mode = #tpu.pipeline_mode<synchronous>, transform_indices = @transform_4, window_bounds = array<i64: 3, 384, 128>}, {pipeline_mode = #tpu.pipeline_mode<synchronous>, transform_indices = @transform_5, window_bounds = array<i64: 1, 128>}, {pipeline_mode = #tpu.pipeline_mode<synchronous>, transform_indices = @transform_6, window_bounds = array<i64: 1, 128>}, {transform_indices = @transform_7, window_bounds = array<i64: 1, 8, 8, 128>}]} {
    %c1_i32 = arith.constant 1 : i32
    %c0_i32 = arith.constant 0 : i32
    %0 = arith.cmpi eq, %c1_i32, %c0_i32 : i32
    %c1_i32_0 = arith.constant 1 : i32
    %1 = arith.select %0, %c1_i32_0, %c1_i32 : i32
    %2 = arith.remsi %arg0, %1 : i32
    %c0_i32_1 = arith.constant 0 : i32
    %3 = arith.cmpi ne, %2, %c0_i32_1 : i32
    %c0_i32_2 = arith.constant 0 : i32
    %4 = arith.cmpi slt, %2, %c0_i32_2 : i32
    %c0_i32_3 = arith.constant 0 : i32
    %5 = arith.cmpi slt, %1, %c0_i32_3 : i32
    %6 = arith.xori %4, %5 : i1
    %7 = arith.andi %6, %3 : i1
    %8 = arith.addi %2, %1 : i32
    %9 = arith.select %7, %8, %2 : i32
    %c8_i32 = arith.constant 8 : i32
    %10 = arith.muli %9, %c8_i32 : i32
    %c0 = arith.constant 0 : index
    %c0_4 = arith.constant 0 : index
    %c0_5 = arith.constant 0 : index
    %c0_6 = arith.constant 0 : index
    %c0_7 = arith.constant 0 : index
    %11 = vector.load %arg1[%c0, %c0_4, %c0_5, %c0_6, %c0_7] : memref<1x12x4x10x4xf32, #tpu.memory_space<vmem>>, vector<1x12x4x10x4xf32>
    %12 = vector.shape_cast %11 : vector<1x12x4x10x4xf32> to vector<12x4x10x4xf32>
    %13 = vector.extract_strided_slice %12 {offsets = [0, 0, 0, 0], sizes = [12, 1, 10, 4], strides = [1, 1, 1, 1]} : vector<12x4x10x4xf32> to vector<12x1x10x4xf32>
    %14 = vector.shape_cast %13 : vector<12x1x10x4xf32> to vector<12x10x4xf32>
    %15 = vector.extract_strided_slice %12 {offsets = [0, 1, 0, 0], sizes = [12, 1, 10, 4], strides = [1, 1, 1, 1]} : vector<12x4x10x4xf32> to vector<12x1x10x4xf32>
    %16 = vector.shape_cast %15 : vector<12x1x10x4xf32> to vector<12x10x4xf32>
    %17 = arith.maximumf %14, %16 : vector<12x10x4xf32>
    %18 = vector.extract_strided_slice %12 {offsets = [0, 2, 0, 0], sizes = [12, 1, 10, 4], strides = [1, 1, 1, 1]} : vector<12x4x10x4xf32> to vector<12x1x10x4xf32>
    %19 = vector.shape_cast %18 : vector<12x1x10x4xf32> to vector<12x10x4xf32>
    %20 = vector.extract_strided_slice %12 {offsets = [0, 3, 0, 0], sizes = [12, 1, 10, 4], strides = [1, 1, 1, 1]} : vector<12x4x10x4xf32> to vector<12x1x10x4xf32>
    %21 = vector.shape_cast %20 : vector<12x1x10x4xf32> to vector<12x10x4xf32>
    %22 = arith.maximumf %19, %21 : vector<12x10x4xf32>
    %23 = arith.maximumf %17, %22 : vector<12x10x4xf32>
    %24 = arith.truncf %23 : vector<12x10x4xf32> to vector<12x10x4xbf16>
    %cst = arith.constant 0.000000e+00 : f32
    %25 = vector.broadcast %cst : f32 to vector<80x128xf32>
    %26 = vector.extract_strided_slice %24 {offsets = [0, 0, 0], sizes = [10, 8, 4], strides = [1, 1, 1]} : vector<12x10x4xbf16> to vector<10x8x4xbf16>
    %27 = vector.extract_strided_slice %24 {offsets = [0, 1, 0], sizes = [10, 8, 4], strides = [1, 1, 1]} : vector<12x10x4xbf16> to vector<10x8x4xbf16>
    %28 = vector.extract_strided_slice %24 {offsets = [0, 2, 0], sizes = [10, 8, 4], strides = [1, 1, 1]} : vector<12x10x4xbf16> to vector<10x8x4xbf16>
    %29 = tpu.concatenate %26, %27, %28 in 2 : vector<10x8x4xbf16>, vector<10x8x4xbf16>, vector<10x8x4xbf16> -> vector<10x8x12xbf16>
    %30 = vector.shape_cast %29 : vector<10x8x12xbf16> to vector<80x12xbf16>
    %c0_8 = arith.constant 0 : index
    %c0_9 = arith.constant 0 : index
    %c0_10 = arith.constant 0 : index
    %31 = vector.load %arg2[%c0_8, %c0_9, %c0_10] : memref<3x12x128xbf16, #tpu.memory_space<vmem>>, vector<1x12x128xbf16>
    %32 = vector.shape_cast %31 : vector<1x12x128xbf16> to vector<12x128xbf16>
    %cst_11 = arith.constant dense<0.000000e+00> : vector<80x128xf32>
    %33 = tpu.matmul %30, %32, %cst_11 {dimension_numbers = #tpu.dot_dimension_numbers<[1], [0], [0], [1], [0, 0, 1, 1], [], []>} : vector<80x12xbf16>, vector<12x128xbf16>, vector<80x128xf32> -> vector<80x128xf32>
    %34 = arith.addf %25, %33 : vector<80x128xf32>
    %35 = vector.extract_strided_slice %24 {offsets = [1, 0, 0], sizes = [10, 8, 4], strides = [1, 1, 1]} : vector<12x10x4xbf16> to vector<10x8x4xbf16>
    %36 = vector.extract_strided_slice %24 {offsets = [1, 1, 0], sizes = [10, 8, 4], strides = [1, 1, 1]} : vector<12x10x4xbf16> to vector<10x8x4xbf16>
    %37 = vector.extract_strided_slice %24 {offsets = [1, 2, 0], sizes = [10, 8, 4], strides = [1, 1, 1]} : vector<12x10x4xbf16> to vector<10x8x4xbf16>
    %38 = tpu.concatenate %35, %36, %37 in 2 : vector<10x8x4xbf16>, vector<10x8x4xbf16>, vector<10x8x4xbf16> -> vector<10x8x12xbf16>
    %39 = vector.shape_cast %38 : vector<10x8x12xbf16> to vector<80x12xbf16>
    %c1 = arith.constant 1 : index
    %c0_12 = arith.constant 0 : index
    %c0_13 = arith.constant 0 : index
    %40 = vector.load %arg2[%c1, %c0_12, %c0_13] : memref<3x12x128xbf16, #tpu.memory_space<vmem>>, vector<1x12x128xbf16>
    %41 = vector.shape_cast %40 : vector<1x12x128xbf16> to vector<12x128xbf16>
    %cst_14 = arith.constant dense<0.000000e+00> : vector<80x128xf32>
    %42 = tpu.matmul %39, %41, %cst_14 {dimension_numbers = #tpu.dot_dimension_numbers<[1], [0], [0], [1], [0, 0, 1, 1], [], []>} : vector<80x12xbf16>, vector<12x128xbf16>, vector<80x128xf32> -> vector<80x128xf32>
    %43 = arith.addf %34, %42 : vector<80x128xf32>
    %44 = vector.extract_strided_slice %24 {offsets = [2, 0, 0], sizes = [10, 8, 4], strides = [1, 1, 1]} : vector<12x10x4xbf16> to vector<10x8x4xbf16>
    %45 = vector.extract_strided_slice %24 {offsets = [2, 1, 0], sizes = [10, 8, 4], strides = [1, 1, 1]} : vector<12x10x4xbf16> to vector<10x8x4xbf16>
    %46 = vector.extract_strided_slice %24 {offsets = [2, 2, 0], sizes = [10, 8, 4], strides = [1, 1, 1]} : vector<12x10x4xbf16> to vector<10x8x4xbf16>
    %47 = tpu.concatenate %44, %45, %46 in 2 : vector<10x8x4xbf16>, vector<10x8x4xbf16>, vector<10x8x4xbf16> -> vector<10x8x12xbf16>
    %48 = vector.shape_cast %47 : vector<10x8x12xbf16> to vector<80x12xbf16>
    %c2 = arith.constant 2 : index
    %c0_15 = arith.constant 0 : index
    %c0_16 = arith.constant 0 : index
    %49 = vector.load %arg2[%c2, %c0_15, %c0_16] : memref<3x12x128xbf16, #tpu.memory_space<vmem>>, vector<1x12x128xbf16>
    %50 = vector.shape_cast %49 : vector<1x12x128xbf16> to vector<12x128xbf16>
    %cst_17 = arith.constant dense<0.000000e+00> : vector<80x128xf32>
    %51 = tpu.matmul %48, %50, %cst_17 {dimension_numbers = #tpu.dot_dimension_numbers<[1], [0], [0], [1], [0, 0, 1, 1], [], []>} : vector<80x12xbf16>, vector<12x128xbf16>, vector<80x128xf32> -> vector<80x128xf32>
    %52 = arith.addf %43, %51 : vector<80x128xf32>
    %c0_18 = arith.constant 0 : index
    %c0_19 = arith.constant 0 : index
    %53 = vector.load %arg3[%c0_18, %c0_19] : memref<1x128xf32, #tpu.memory_space<vmem>>, vector<1x128xf32>
    %54 = vector.broadcast %53 : vector<1x128xf32> to vector<80x128xf32>
    %55 = arith.mulf %52, %54 : vector<80x128xf32>
    %c0_20 = arith.constant 0 : index
    %c0_21 = arith.constant 0 : index
    %56 = vector.load %arg4[%c0_20, %c0_21] : memref<1x128xf32, #tpu.memory_space<vmem>>, vector<1x128xf32>
    %57 = vector.broadcast %56 : vector<1x128xf32> to vector<80x128xf32>
    %58 = arith.addf %55, %57 : vector<80x128xf32>
    %cst_22 = arith.constant 0.000000e+00 : f32
    %59 = vector.broadcast %cst_22 : f32 to vector<80x128xf32>
    %60 = arith.maximumf %58, %59 : vector<80x128xf32>
    %61 = vector.shape_cast %60 : vector<80x128xf32> to vector<10x8x128xf32>
    %c1_i32_23 = arith.constant 1 : i32
    %62 = arith.subi %10, %c1_i32_23 : i32
    %63 = tpu.iota {dimensions = array<i32: 0>} : vector<10x1x1xi32>
    %64 = vector.broadcast %62 : i32 to vector<10x1x1xi32>
    %65 = arith.addi %64, %63 : vector<10x1x1xi32>
    %c0_i32_24 = arith.constant 0 : i32
    %66 = vector.broadcast %c0_i32_24 : i32 to vector<10x1x1xi32>
    %67 = arith.cmpi sge, %65, %66 : vector<10x1x1xi32>
    %c8_i32_25 = arith.constant 8 : i32
    %68 = vector.broadcast %c8_i32_25 : i32 to vector<10x1x1xi32>
    %69 = arith.cmpi slt, %65, %68 : vector<10x1x1xi32>
    %70 = arith.andi %67, %69 : vector<10x1x1xi1>
    %cst_26 = arith.constant 0.000000e+00 : f32
    %71 = vector.shape_cast %70 : vector<10x1x1xi1> to vector<10x1x1xi1>
    %72 = vector.broadcast %71 : vector<10x1x1xi1> to vector<10x8x128xi1>
    %73 = vector.broadcast %cst_26 : f32 to vector<10x8x128xf32>
    %74 = arith.select %72, %61, %73 : vector<10x8x128xi1>, vector<10x8x128xf32>
    %cst_27 = arith.constant 0.000000e+00 : bf16
    %75 = vector.broadcast %cst_27 : bf16 to vector<10x1x128xbf16>
    %c0_28 = arith.constant 0 : index
    %c7 = arith.constant 7 : index
    %c0_29 = arith.constant 0 : index
    %76 = vector.load %arg9[%c0_28, %c7, %c0_29] : memref<10x24x128xbf16, #tpu.memory_space<vmem>>, vector<10x1x128xbf16>
    tpu.vector_store %arg9[%c0_28, %c7, %c0_29], %75 {strides = array<i32>} : memref<10x24x128xbf16, #tpu.memory_space<vmem>>, vector<10x1x128xbf16>,
    %c0_30 = arith.constant 0 : index
    %c16 = arith.constant 16 : index
    %c0_31 = arith.constant 0 : index
    %77 = vector.load %arg9[%c0_30, %c16, %c0_31] : memref<10x24x128xbf16, #tpu.memory_space<vmem>>, vector<10x1x128xbf16>
    tpu.vector_store %arg9[%c0_30, %c16, %c0_31], %75 {strides = array<i32>} : memref<10x24x128xbf16, #tpu.memory_space<vmem>>, vector<10x1x128xbf16>,
    %78 = arith.truncf %74 : vector<10x8x128xf32> to vector<10x8x128xbf16>
    %c0_32 = arith.constant 0 : index
    %c8 = arith.constant 8 : index
    %c0_33 = arith.constant 0 : index
    %79 = vector.load %arg9[%c0_32, %c8, %c0_33] : memref<10x24x128xbf16, #tpu.memory_space<vmem>>, vector<10x8x128xbf16>
    tpu.vector_store %arg9[%c0_32, %c8, %c0_33], %78 {strides = array<i32>} : memref<10x24x128xbf16, #tpu.memory_space<vmem>>, vector<10x8x128xbf16>,
    %cst_34 = arith.constant 0.000000e+00 : f32
    %80 = vector.broadcast %cst_34 : f32 to vector<64x128xf32>
    %c0_35 = arith.constant 0 : index
    %c7_36 = arith.constant 7 : index
    %c0_37 = arith.constant 0 : index
    %81 = vector.load %arg9[%c0_35, %c7_36, %c0_37] : memref<10x24x128xbf16, #tpu.memory_space<vmem>>, vector<8x8x128xbf16>
    %c0_38 = arith.constant 0 : index
    %c8_39 = arith.constant 8 : index
    %c0_40 = arith.constant 0 : index
    %82 = vector.load %arg9[%c0_38, %c8_39, %c0_40] : memref<10x24x128xbf16, #tpu.memory_space<vmem>>, vector<8x8x128xbf16>
    %c0_41 = arith.constant 0 : index
    %c9 = arith.constant 9 : index
    %c0_42 = arith.constant 0 : index
    %83 = vector.load %arg9[%c0_41, %c9, %c0_42] : memref<10x24x128xbf16, #tpu.memory_space<vmem>>, vector<8x8x128xbf16>
    %84 = tpu.concatenate %81, %82, %83 in 2 : vector<8x8x128xbf16>, vector<8x8x128xbf16>, vector<8x8x128xbf16> -> vector<8x8x384xbf16>
    %85 = vector.shape_cast %84 : vector<8x8x384xbf16> to vector<64x384xbf16>
    %c0_43 = arith.constant 0 : index
    %c0_44 = arith.constant 0 : index
    %c0_45 = arith.constant 0 : index
    %86 = vector.load %arg5[%c0_43, %c0_44, %c0_45] : memref<3x384x128xbf16, #tpu.memory_space<vmem>>, vector<1x384x128xbf16>
    %87 = vector.shape_cast %86 : vector<1x384x128xbf16> to vector<384x128xbf16>
    %cst_46 = arith.constant dense<0.000000e+00> : vector<64x128xf32>
    %88 = tpu.matmul %85, %87, %cst_46 {dimension_numbers = #tpu.dot_dimension_numbers<[1], [0], [0], [1], [0, 0, 1, 1], [], []>} : vector<64x384xbf16>, vector<384x128xbf16>, vector<64x128xf32> -> vector<64x128xf32>
    %89 = arith.addf %80, %88 : vector<64x128xf32>
    %c1_47 = arith.constant 1 : index
    %c7_48 = arith.constant 7 : index
    %c0_49 = arith.constant 0 : index
    %90 = vector.load %arg9[%c1_47, %c7_48, %c0_49] : memref<10x24x128xbf16, #tpu.memory_space<vmem>>, vector<8x8x128xbf16>
    %c1_50 = arith.constant 1 : index
    %c8_51 = arith.constant 8 : index
    %c0_52 = arith.constant 0 : index
    %91 = vector.load %arg9[%c1_50, %c8_51, %c0_52] : memref<10x24x128xbf16, #tpu.memory_space<vmem>>, vector<8x8x128xbf16>
    %c1_53 = arith.constant 1 : index
    %c9_54 = arith.constant 9 : index
    %c0_55 = arith.constant 0 : index
    %92 = vector.load %arg9[%c1_53, %c9_54, %c0_55] : memref<10x24x128xbf16, #tpu.memory_space<vmem>>, vector<8x8x128xbf16>
    %93 = tpu.concatenate %90, %91, %92 in 2 : vector<8x8x128xbf16>, vector<8x8x128xbf16>, vector<8x8x128xbf16> -> vector<8x8x384xbf16>
    %94 = vector.shape_cast %93 : vector<8x8x384xbf16> to vector<64x384xbf16>
    %c1_56 = arith.constant 1 : index
    %c0_57 = arith.constant 0 : index
    %c0_58 = arith.constant 0 : index
    %95 = vector.load %arg5[%c1_56, %c0_57, %c0_58] : memref<3x384x128xbf16, #tpu.memory_space<vmem>>, vector<1x384x128xbf16>
    %96 = vector.shape_cast %95 : vector<1x384x128xbf16> to vector<384x128xbf16>
    %cst_59 = arith.constant dense<0.000000e+00> : vector<64x128xf32>
    %97 = tpu.matmul %94, %96, %cst_59 {dimension_numbers = #tpu.dot_dimension_numbers<[1], [0], [0], [1], [0, 0, 1, 1], [], []>} : vector<64x384xbf16>, vector<384x128xbf16>, vector<64x128xf32> -> vector<64x128xf32>
    %98 = arith.addf %89, %97 : vector<64x128xf32>
    %c2_60 = arith.constant 2 : index
    %c7_61 = arith.constant 7 : index
    %c0_62 = arith.constant 0 : index
    %99 = vector.load %arg9[%c2_60, %c7_61, %c0_62] : memref<10x24x128xbf16, #tpu.memory_space<vmem>>, vector<8x8x128xbf16>
    %c2_63 = arith.constant 2 : index
    %c8_64 = arith.constant 8 : index
    %c0_65 = arith.constant 0 : index
    %100 = vector.load %arg9[%c2_63, %c8_64, %c0_65] : memref<10x24x128xbf16, #tpu.memory_space<vmem>>, vector<8x8x128xbf16>
    %c2_66 = arith.constant 2 : index
    %c9_67 = arith.constant 9 : index
    %c0_68 = arith.constant 0 : index
    %101 = vector.load %arg9[%c2_66, %c9_67, %c0_68] : memref<10x24x128xbf16, #tpu.memory_space<vmem>>, vector<8x8x128xbf16>
    %102 = tpu.concatenate %99, %100, %101 in 2 : vector<8x8x128xbf16>, vector<8x8x128xbf16>, vector<8x8x128xbf16> -> vector<8x8x384xbf16>
    %103 = vector.shape_cast %102 : vector<8x8x384xbf16> to vector<64x384xbf16>
    %c2_69 = arith.constant 2 : index
    %c0_70 = arith.constant 0 : index
    %c0_71 = arith.constant 0 : index
    %104 = vector.load %arg5[%c2_69, %c0_70, %c0_71] : memref<3x384x128xbf16, #tpu.memory_space<vmem>>, vector<1x384x128xbf16>
    %105 = vector.shape_cast %104 : vector<1x384x128xbf16> to vector<384x128xbf16>
    %cst_72 = arith.constant dense<0.000000e+00> : vector<64x128xf32>
    %106 = tpu.matmul %103, %105, %cst_72 {dimension_numbers = #tpu.dot_dimension_numbers<[1], [0], [0], [1], [0, 0, 1, 1], [], []>} : vector<64x384xbf16>, vector<384x128xbf16>, vector<64x128xf32> -> vector<64x128xf32>
    %107 = arith.addf %98, %106 : vector<64x128xf32>
    %c0_73 = arith.constant 0 : index
    %c0_74 = arith.constant 0 : index
    %108 = vector.load %arg6[%c0_73, %c0_74] : memref<1x128xf32, #tpu.memory_space<vmem>>, vector<1x128xf32>
    %109 = vector.broadcast %108 : vector<1x128xf32> to vector<64x128xf32>
    %110 = arith.mulf %107, %109 : vector<64x128xf32>
    %c0_75 = arith.constant 0 : index
    %c0_76 = arith.constant 0 : index
    %111 = vector.load %arg7[%c0_75, %c0_76] : memref<1x128xf32, #tpu.memory_space<vmem>>, vector<1x128xf32>
    %112 = vector.broadcast %111 : vector<1x128xf32> to vector<64x128xf32>
    %113 = arith.addf %110, %112 : vector<64x128xf32>
    %cst_77 = arith.constant 0.000000e+00 : f32
    %114 = vector.broadcast %cst_77 : f32 to vector<64x128xf32>
    %115 = arith.maximumf %113, %114 : vector<64x128xf32>
    %116 = vector.shape_cast %115 : vector<64x128xf32> to vector<8x8x128xf32>
    %c0_78 = arith.constant 0 : index
    %c0_79 = arith.constant 0 : index
    %c0_80 = arith.constant 0 : index
    %c0_81 = arith.constant 0 : index
    %117 = vector.load %arg8[%c0_78, %c0_79, %c0_80, %c0_81] : memref<1x8x8x128xf32, #tpu.memory_space<vmem>>, vector<1x8x8x128xf32>
    %118 = vector.shape_cast %117 : vector<1x8x8x128xf32> to vector<8x8x128xf32>
    %119 = vector.shape_cast %116 : vector<8x8x128xf32> to vector<1x8x8x128xf32>
    tpu.vector_store %arg8[%c0_78, %c0_79, %c0_80, %c0_81], %119 {strides = array<i32>} : memref<1x8x8x128xf32, #tpu.memory_space<vmem>>, vector<1x8x8x128xf32>,
    return
  }
  func.func @transform_0(%arg0: i32) -> (i32, i32, i32, i32, i32) {
    %c0_i32 = arith.constant 0 : i32
    %c0_i32_0 = arith.constant 0 : i32
    %c0_i32_1 = arith.constant 0 : i32
    %c0_i32_2 = arith.constant 0 : i32
    %c0_i32_3 = arith.constant 0 : i32
    return %arg0, %c0_i32, %c0_i32_0, %c0_i32_1, %c0_i32_2 : i32, i32, i32, i32, i32
  }
  func.func @transform_1(%arg0: i32) -> (i32, i32, i32) {
    %c0_i32 = arith.constant 0 : i32
    %c0_i32_0 = arith.constant 0 : i32
    %c0_i32_1 = arith.constant 0 : i32
    %c0_i32_2 = arith.constant 0 : i32
    return %c0_i32, %c0_i32_0, %c0_i32_1 : i32, i32, i32
  }
  func.func @transform_2(%arg0: i32) -> (i32, i32) {
    %c0_i32 = arith.constant 0 : i32
    %c0_i32_0 = arith.constant 0 : i32
    %c0_i32_1 = arith.constant 0 : i32
    return %c0_i32, %c0_i32_0 : i32, i32
  }
  func.func @transform_3(%arg0: i32) -> (i32, i32) {
    %c0_i32 = arith.constant 0 : i32
    %c0_i32_0 = arith.constant 0 : i32
    %c0_i32_1 = arith.constant 0 : i32
    return %c0_i32, %c0_i32_0 : i32, i32
  }
  func.func @transform_4(%arg0: i32) -> (i32, i32, i32) {
    %c0_i32 = arith.constant 0 : i32
    %c0_i32_0 = arith.constant 0 : i32
    %c0_i32_1 = arith.constant 0 : i32
    %c0_i32_2 = arith.constant 0 : i32
    return %c0_i32, %c0_i32_0, %c0_i32_1 : i32, i32, i32
  }
  func.func @transform_5(%arg0: i32) -> (i32, i32) {
    %c0_i32 = arith.constant 0 : i32
    %c0_i32_0 = arith.constant 0 : i32
    %c0_i32_1 = arith.constant 0 : i32
    return %c0_i32, %c0_i32_0 : i32, i32
  }
  func.func @transform_6(%arg0: i32) -> (i32, i32) {
    %c0_i32 = arith.constant 0 : i32
    %c0_i32_0 = arith.constant 0 : i32
    %c0_i32_1 = arith.constant 0 : i32
    return %c0_i32, %c0_i32_0 : i32, i32
  }
  func.func @transform_7(%arg0: i32) -> (i32, i32, i32, i32) {
    %c0_i32 = arith.constant 0 : i32
    %c0_i32_0 = arith.constant 0 : i32
    %c0_i32_1 = arith.constant 0 : i32
    %c0_i32_2 = arith.constant 0 : i32
    return %arg0, %c0_i32, %c0_i32_0, %c0_i32_1 : i32, i32, i32, i32
  }
}

</mosaic_0001>

<bundles_post_ra>
// kernel: tpu_custom_call.1
= control target key start
LH: loop header
LB: loop body
LE: loop exit
PB: predicated region body
PF: predicated region fallthrough
CT: control target
= control target key end

     0   :  { %12 = vsyncpa [#allocation4], 0  ;;  %s6011_s0 = inlined_call_operand.vmem [shape: f32[2,12,4,10,4], index: 0, kind: input, shape index: {}]   ;;  %s6012_s1 = inlined_call_operand.vmem [shape: bf16[3,12,128], index: 1, kind: input, shape index: {}]   ;;  %s6013_s2 = inlined_call_operand.vmem [shape: f32[1,128], index: 2, kind: input, shape index: {}]   ;;  %s6014_s3 = inlined_call_operand.vmem [shape: f32[1,128], index: 3, kind: input, shape index: {}]   ;;  %s6015_s4 = inlined_call_operand.vmem [shape: bf16[3,384,128], index: 4, kind: input, shape index: {}]   ;;  %s6016_s5 = inlined_call_operand.vmem [shape: f32[1,128], index: 5, kind: input, shape index: {}]   ;;  %s6017_s6 = inlined_call_operand.vmem [shape: f32[1,128], index: 6, kind: input, shape index: {}]   ;;  %s6018_s7 = inlined_call_operand.hbm [shape: f32[2,8,8,128], index: 7, kind: output, shape index: {}]  }
   0x1   :  { %14 = vsyncpa [#allocation4 + $0x1], 0  ;;  %s4835_s24 = smov 0   ;;  %s4837_s25 = smov 0  }
   0x2   :  { %s4839_s26 = smov 0   ;;  %s4841_s27 = smov 0  }
   0x3 LB: > { %s4856_s28 = sadd.s32 4294967295, %s4786_s27   ;;  %s3677_s29 = sadd.s32 4294967294, %s4786_s27   ;;  %s4786_s27 = sphi %s4841_s27, %s6030_s27   ;;  %s4782_s26 = sphi %s4839_s26, %s6029_s26   ;;  %s4778_s25 = sphi %s4837_s25, %s6028_s25   ;;  %s4774_s24 = sphi %s4835_s24, %s6027_s24  }
   0x4   : > { %s4860_s30 = sadd.s32 1, %s4786_s27   ;;  %s179_s8 = sadd.s32 1, %s4782_s26 }
   0x5   : > { %s176_s9 = ssub.s32 %s4786_s27, %s4860_s30  ;;  %p189_p0 = scmp.ne.s32.totalorder %s4782_s26, %s4778_s25 }
   0x6   : > { %p177_p1 = scmp.eq.s32.totalorder %s176_s9, 0  ;;  %p190_p2 = scmp.eq.s32.totalorder %s4856_s28, 1 }
   0x7   : > { %p195_p3 = scmp.ne.s32.totalorder %s4778_s25, %s4774_s24  ;;  %p196_p4 = scmp.eq.s32.totalorder %s3677_s29, 1 }
   0x8   : > { %s4871_s10 = scalar_select %p177_p1, %s4782_s26, %s179_s8  }
   0x9   : > { %p4873_p5 = por %p190_p2, %p189_p0  ;;  %p4877_p6 = por %p196_p4, %p195_p3 }
   0xa   : > { %p3680_p7 = scmp.ge.s32.totalorder %s4786_s27, 1  ;;  %p240_p8 = scmp.lt.s32.totalorder %s4786_s27, 3 }
   0xc   : > { %p241_p9 = pnand %p3680_p7, %p240_p8 }
   0xd   : > { %p272_p10 = scmp.lt.s32.totalorder (!%p241_p9), %s4856_s28, 1  ;;  %v4788_v21 = vmov (!%p241_p9), 0.0   ;;  %vm4789_vm0 = vmmov (!%p241_p9), 0   ;;  %s4790_s18 = smov (!%p241_p9), 8   ;;  %vm698_vm1 = vcmask (!%p241_p9), 1045504   ;;  %vm588_vm2 = vcmask (!%p241_p9), 31744  }
   0xe   : > { %244 = sbr.rel (%p241_p9) target bundleno = 900 (0x384), region = 48  ;;  %4320 = vmatprep.subr.bf16.mxu0 (!%p241_p9), %v4788_v21  ;;  %4322 = vmatprep.mubr.msk.bf16.mxu0 (!%p241_p9), %vm4789_vm0, %v4788_v21  ;;  %s4791_s19 = smov (!%p241_p9), 4   ;;  %vm609_vm3 = vcmask (!%p241_p9), 64512   ;;  %vm682_vm4 = vcmask (!%p241_p9), 97280   ;;  %vm1049_vm5 = vcmask (!%p241_p9), 1043459   ;;  %vm1082_vm9 = vcmask (!%p241_p9), 1040384  }
   0xf   : > { %vm1050_vm6 = vsmask.f32 (!%p241_p9), 7950  ;;  %vm1083_vm8 = vsmask.f32 (!%p241_p9), 256  ;;  %vm3736_vm11 = vcmask (!%p241_p9), 1043456  ;;  %s269_s21 = sand.u32 (!%p241_p9), 1, %s4778_s25  }
  0x10   : > { %vm5201_vm7 = vmand (!%p241_p9), %vm1049_vm5, %vm1050_vm6  ;;  %vm1359_vm12 = vsmask.f32 (!%p241_p9), 4368  ;;  %s3681_s9 = sshll.u32 (!%p241_p9), %s269_s21, 6  ;;  %s4793_s22 = smov (!%p241_p9), [#allocation3]  }
  0x11   : > { %vm5223_vm10 = vmand (!%p241_p9), %vm1082_vm9, %vm1083_vm8  ;;  %s4728_s23 = sshll.u32 (!%p241_p9), %s4793_s22, 4  ;;  %s4729_s23 = int_to_ptr.vmem [resolvable:$false] %s4728_s23 }
  0x12   : > { %vm5369_vm13 = vmor (!%p241_p9), %vm1083_vm8, %vm1359_vm12  ;;  %s4730_s29 = scalar_lea.vmem (!%p241_p9), %s4729_s23, 2048 }
  0x15   : > { %s273_s13 = scalar_select %p272_p10, %s4856_s28, 1 }
  0x17   : > { %s4554_s14 = smul.u32 768, %s273_s13  ;;  %s5948_s13 = scalar_lea.vmem [#allocation3], %s3681_s9 }
  0x18   : > { %s3615_s15 = sshll.u32 %s5948_s13, 4  ;;  %s5963_s15 = int_to_ptr.vmem [resolvable:$true] %s3615_s15 }
  0x19   : > { %s4888_s17 = scalar_lea.vmem %s6011_s0, %s4554_s14  ;;  %s4145_s14 = sshll.u32 %s4856_s28, 10 }
  0x1a   : > { %v286_v0 = vld [vmem:[%s4888_s17 + $0x40] sm:$0xff]  ;;  %v287_v1 = vld [vmem:[%s4888_s17 + $0x48] sm:$0x3]  ;;  %v288_v2 = vld [vmem:[%s4888_s17 + $0x50] sm:$0xff]  ;;  %s5969_s28 = scalar_lea.sflag [#allocation4], %s269_s21  ;;  %s4724_s20 = scalar_lea.vmem %s5963_s15, 1024 }
  0x1b   : > { %v289_v3 = vld [vmem:[%s4888_s17 + $0x58] sm:$0x3]  ;;  %v290_v4 = vld [vmem:[%s4888_s17 + $0x60] sm:$0xff]  ;;  %v291_v5 = vld [vmem:[%s4888_s17 + $0x68] sm:$0x3]  ;;  %v376_v6 = vmax.f32 %v286_v0, %v288_v2  ;;  %p4725_p11 = scmp.ne.s32.totalorder %s5963_s15, %s4724_s20  ;;  %p4731_p0 = scmp.lt.s32.totalorder %s5963_s15, %s4729_s23 }
  0x1c   : > { %v292_v7 = vld [vmem:[%s4888_s17 + $0x70] sm:$0xff]  ;;  %v293_v8 = vld [vmem:[%s4888_s17 + $0x78] sm:$0x3]  ;;  %v377_v9 = vmax.f32 %v287_v1, %v289_v3  ;;  %v294_v10 = vld [vmem:[%s4888_s17 + $0x80] sm:$0xff]  ;;  %p4732_p1 = scmp.lt.s32.totalorder %s4730_s29, %s4724_s20 }
  0x1d   : > { %v400_v11 = vmax.f32 %v290_v4, %v292_v7  ;;  %v401_v12 = vmax.f32 %v291_v5, %v293_v8  ;;  %v295_v13 = vld [vmem:[%s4888_s17 + $0x88] sm:$0x3]  ;;  %v296_v14 = vld [vmem:[%s4888_s17 + $0x90] sm:$0xff]  ;;  %v297_v15 = vld [vmem:[%s4888_s17 + $0x98] sm:$0x3]  ;;  %p4726_p12 = pnand %p4725_p11, %p4873_p5 }
  0x1e   : > { %v298_v16 = vld [vmem:[%s4888_s17 + $0xa0] sm:$0xff]  ;;  %v299_v17 = vld [vmem:[%s4888_s17 + $0xa8] sm:$0x3]  ;;  %v300_v18 = vld [vmem:[%s4888_s17 + $0xb0] sm:$0xff]  ;;  %v378_v19 = vmax.f32 %v294_v10, %v296_v14  ;;  %v379_v20 = vmax.f32 %v295_v13, %v297_v15  ;;  %p4733_p2 = por %p4732_p1, %p4731_p0 }
  0x1f   : > { %v424_v22 = vmax.f32 %v376_v6, %v400_v11  ;;  %v425_v23 = vmax.f32 %v377_v9, %v401_v12  ;;  %v301_v24 = vld [vmem:[%s4888_s17 + $0xb8] sm:$0x3]  ;;  %v402_v25 = vmax.f32 %v298_v16, %v300_v18  ;;  %v310_v26 = vld [vmem:[%s4888_s17 + $0x100] sm:$0xff]  ;;  %v311_v27 = vld [vmem:[%s4888_s17 + $0x108] sm:$0x3]  ;;  %p4727_p13 = pneg %p4726_p12 }
  0x20   : > { %v403_v28 = vmax.f32 %v299_v17, %v301_v24  ;;  %v312_v29 = vld [vmem:[%s4888_s17 + $0x110] sm:$0xff]  ;;  %v313_v30 = vld [vmem:[%s4888_s17 + $0x118] sm:$0x3]  ;;  %v314_v31 = vld [vmem:[%s4888_s17 + $0x120] sm:$0xff] }
  0x21   : > { %v4912_v32 = vpack.c.bf16 %v425_v23, %v424_v22  ;;  %v426_v33 = vmax.f32 %v378_v19, %v402_v25  ;;  %v315_v34 = vld [vmem:[%s4888_s17 + $0x128] sm:$0x3]  ;;  %v316_v35 = vld [vmem:[%s4888_s17 + $0x130] sm:$0xff]  ;;  %v317_v36 = vld [vmem:[%s4888_s17 + $0x138] sm:$0x3]  ;;  %v382_v37 = vmax.f32 %v310_v26, %v312_v29  ;;  %v383_v38 = vmax.f32 %v311_v27, %v313_v30  ;;  %p4734_p3 = pnand %p4733_p2, %p4727_p13 }
  0x22   : > { %v427_v39 = vmax.f32 %v379_v20, %v403_v28  ;;  %v406_v40 = vmax.f32 %v314_v31, %v316_v35  ;;  %v407_v41 = vmax.f32 %v315_v34, %v317_v36  ;;  %v302_v42 = vld [vmem:[%s4888_s17 + $0xc0] sm:$0xff]  ;;  %v303_v43 = vld [vmem:[%s4888_s17 + $0xc8] sm:$0x3]  ;;  %v304_v44 = vld [vmem:[%s4888_s17 + $0xd0] sm:$0xff] }
  0x23   : > { %v559_v45 = vrot.slane %v4912_v32, 1  ;;  %v466_v46 = vshrl.u32 %v4912_v32, 16  ;;  %v468_v47 = vshll.u32 %v4912_v32, 16  ;;  %v305_v48 = vld [vmem:[%s4888_s17 + $0xd8] sm:$0x3]  ;;  %v306_v49 = vld [vmem:[%s4888_s17 + $0xe0] sm:$0xff]  ;;  %v380_v50 = vmax.f32 %v302_v42, %v304_v44 }
  0x24   : > { %v4927_v51 = vpack.c.bf16 %v427_v39, %v426_v33  ;;  %v430_v52 = vmax.f32 %v382_v37, %v406_v40  ;;  %v431_v53 = vmax.f32 %v383_v38, %v407_v41  ;;  %v307_v54 = vld [vmem:[%s4888_s17 + $0xe8] sm:$0x3]  ;;  %v308_v55 = vld [vmem:[%s4888_s17 + $0xf0] sm:$0xff]  ;;  %v309_v56 = vld [vmem:[%s4888_s17 + $0xf8] sm:$0x3]  ;;  %v381_v57 = vmax.f32 %v303_v43, %v305_v48 }
  0x25   : > { %570 = vrot.lane.b32.xlu1 %v559_v45, %s4790_s18  ;;  %v470_v58 = vrot.slane %v468_v47, 1  ;;  %v404_v59 = vmax.f32 %v306_v49, %v308_v55  ;;  %v405_v60 = vmax.f32 %v307_v54, %v309_v56  ;;  %v326_v61 = vld [vmem:[%s4888_s17 + $0x180] sm:$0xff]  ;;  %v327_v62 = vld [vmem:[%s4888_s17 + $0x188] sm:$0x3]  ;;  %v328_v63 = vld [vmem:[%s4888_s17 + $0x190] sm:$0xff] }
  0x26   : > { %v560_v0 = vrot.slane %v4927_v51, 1  ;;  %v473_v1 = vshrl.u32 %v4927_v51, 16  ;;  %v475_v2 = vshll.u32 %v4927_v51, 16  ;;  %v4939_v3 = vpack.c.bf16 %v431_v53, %v430_v52  ;;  %v329_v4 = vld [vmem:[%s4888_s17 + $0x198] sm:$0x3]  ;;  %v330_v5 = vld [vmem:[%s4888_s17 + $0x1a0] sm:$0xff] }
  0x27   : > { %v471_v6 = vor.u32 %v470_v58, %v466_v46  ;;  %v428_v7 = vmax.f32 %v380_v50, %v404_v59  ;;  %v429_v8 = vmax.f32 %v381_v57, %v405_v60  ;;  %v331_v9 = vld [vmem:[%s4888_s17 + $0x1a8] sm:$0x3]  ;;  %v332_v10 = vld [vmem:[%s4888_s17 + $0x1b0] sm:$0xff]  ;;  %v333_v11 = vld [vmem:[%s4888_s17 + $0x1b8] sm:$0x3]  ;;  %v386_v12 = vmax.f32 %v326_v61, %v328_v63 }
  0x28   : > { %v477_v13 = vrot.slane %v475_v2, 1  ;;  %v487_v14 = vshrl.u32 %v4939_v3, 16  ;;  %v489_v15 = vshll.u32 %v4939_v3, 16  ;;  %v318_v16 = vld [vmem:[%s4888_s17 + $0x140] sm:$0xff]  ;;  %v320_v17 = vld [vmem:[%s4888_s17 + $0x150] sm:$0xff]  ;;  %v387_v19 = vmax.f32 %v327_v62, %v329_v4 }
  0x29   : > { %530 = vrot.lane.b32.xlu0 %v471_v6, %s4791_s19  ;;  %572 = vrot.lane.b32.xlu1 %v560_v0, %s4790_s18  ;;  %v4952_v18 = vpack.c.bf16 %v429_v8, %v428_v7  ;;  %v410_v20 = vmax.f32 %v330_v5, %v332_v10  ;;  %v319_v22 = vld [vmem:[%s4888_s17 + $0x148] sm:$0x3]  ;;  %v321_v23 = vld [vmem:[%s4888_s17 + $0x158] sm:$0x3]  ;;  %v411_v26 = vmax.f32 %v331_v9, %v333_v11  ;;  %v562_v52 = vrot.slane %v4939_v3, 1 }
  0x2a   : > { %v478_v24 = vor.u32 %v477_v13, %v473_v1  ;;  %v491_v25 = vrot.slane %v489_v15, 1  ;;  %v322_v27 = vld [vmem:[%s4888_s17 + $0x160] sm:$0xff]  ;;  %v323_v28 = vld [vmem:[%s4888_s17 + $0x168] sm:$0x3]  ;;  %v324_v29 = vld [vmem:[%s4888_s17 + $0x170] sm:$0xff]  ;;  %v384_v30 = vmax.f32 %v318_v16, %v320_v17  ;;  %v385_v39 = vmax.f32 %v319_v22, %v321_v23 }
  0x2b   : > { %v480_v31 = vshrl.u32 %v4952_v18, 16  ;;  %v482_v33 = vshll.u32 %v4952_v18, 16  ;;  %v434_v34 = vmax.f32 %v386_v12, %v410_v20  ;;  %v325_v35 = vld [vmem:[%s4888_s17 + $0x178] sm:$0x3]  ;;  %v342_v36 = vld [vmem:[%s4888_s17 + $0x200] sm:$0xff]  ;;  %v435_v38 = vmax.f32 %v387_v19, %v411_v26  ;;  %v344_v42 = vld [vmem:[%s4888_s17 + $0x210] sm:$0xff] }
  0x2c   : > { %v492_v37 = vor.u32 %v491_v25, %v487_v14  ;;  %v408_v40 = vmax.f32 %v322_v27, %v324_v29  ;;  %v343_v41 = vld [vmem:[%s4888_s17 + $0x208] sm:$0x3]  ;;  %v345_v43 = vld [vmem:[%s4888_s17 + $0x218] sm:$0x3]  ;;  %v409_v45 = vmax.f32 %v323_v28, %v325_v35  ;;  %v346_v46 = vld [vmem:[%s4888_s17 + $0x220] sm:$0xff]  ;;  %v390_v49 = vmax.f32 %v342_v36, %v344_v42 }
  0x2d   : > { %532 = vrot.lane.b32.xlu0 %v478_v24, %s4791_s19  ;;  %v484_v44 = vrot.slane %v482_v33, 1  ;;  %v347_v47 = vld [vmem:[%s4888_s17 + $0x228] sm:$0x3]  ;;  %v348_v48 = vld [vmem:[%s4888_s17 + $0x230] sm:$0xff]  ;;  %v391_v50 = vmax.f32 %v343_v41, %v345_v43  ;;  %v4972_v53 = vpack.c.bf16 %v435_v38, %v434_v34  ;;  %v349_v55 = vld [vmem:[%s4888_s17 + $0x238] sm:$0x3] }
  0x2e   : > { %536 = vrot.lane.b32.xlu1 %v492_v37, %s4791_s19  ;;  %v432_v54 = vmax.f32 %v384_v30, %v408_v40  ;;  %v414_v56 = vmax.f32 %v346_v46, %v348_v48  ;;  %v334_v57 = vld [vmem:[%s4888_s17 + $0x1c0] sm:$0xff]  ;;  %v335_v58 = vld [vmem:[%s4888_s17 + $0x1c8] sm:$0x3]  ;;  %v433_v60 = vmax.f32 %v385_v39, %v409_v45  ;;  %v415_v61 = vmax.f32 %v347_v47, %v349_v55  ;;  %v336_v62 = vld [vmem:[%s4888_s17 + $0x1d0] sm:$0xff] }
  0x2f   : > { %v485_v59 = vor.u32 %v484_v44, %v480_v31  ;;  %v337_v63 = vld [vmem:[%s4888_s17 + $0x1d8] sm:$0x3]  ;;  %v338_v0 = vld [vmem:[%s4888_s17 + $0x1e0] sm:$0xff]  ;;  %v561_v1 = vrot.slane %v4952_v18, 1  ;;  %v501_v2 = vshrl.u32 %v4972_v53, 16  ;;  %v503_v4 = vshll.u32 %v4972_v53, 16 }
  0x30   : > { %v438_v5 = vmax.f32 %v390_v49, %v414_v56  ;;  %v339_v6 = vld [vmem:[%s4888_s17 + $0x1e8] sm:$0x3]  ;;  %v340_v7 = vld [vmem:[%s4888_s17 + $0x1f0] sm:$0xff]  ;;  %v4986_v8 = vpack.c.bf16 %v433_v60, %v432_v54  ;;  %v439_v9 = vmax.f32 %v391_v50, %v415_v61  ;;  %v341_v10 = vld [vmem:[%s4888_s17 + $0x1f8] sm:$0x3]  ;;  %v388_v11 = vmax.f32 %v334_v57, %v336_v62 }
  0x31   : > { %534 = vrot.lane.b32.xlu0 %v485_v59, %s4791_s19  ;;  %v389_v12 = vmax.f32 %v335_v58, %v337_v63  ;;  %v358_v13 = vld [vmem:[%s4888_s17 + $0x280] sm:$0xff]  ;;  %v505_v14 = vrot.slane %v503_v4, 1  ;;  %v412_v15 = vmax.f32 %v338_v0, %v340_v7  ;;  %v413_v16 = vmax.f32 %v339_v6, %v341_v10  ;;  %v359_v17 = vld [vmem:[%s4888_s17 + $0x288] sm:$0x3]  ;;  %v360_v19 = vld [vmem:[%s4888_s17 + $0x290] sm:$0xff] }
  0x32   : > { %576 = vrot.lane.b32.xlu1 %v562_v52, %s4790_s18  ;;  %v361_v20 = vld [vmem:[%s4888_s17 + $0x298] sm:$0x3]  ;;  %v494_v22 = vshrl.u32 %v4986_v8, 16  ;;  %v496_v23 = vshll.u32 %v4986_v8, 16  ;;  %v4996_v24 = vpack.c.bf16 %v439_v9, %v438_v5  ;;  %v362_v25 = vld [vmem:[%s4888_s17 + $0x2a0] sm:$0xff]  ;;  %v364_v27 = vld [vmem:[%s4888_s17 + $0x2b0] sm:$0xff]  ;;  %v394_v33 = vmax.f32 %v358_v13, %v360_v19 }
  0x33   : > { %v363_v26 = vld [vmem:[%s4888_s17 + $0x2a8] sm:$0x3]  ;;  %v506_v28 = vor.u32 %v505_v14, %v501_v2  ;;  %v436_v29 = vmax.f32 %v388_v11, %v412_v15  ;;  %v437_v30 = vmax.f32 %v389_v12, %v413_v16  ;;  %v365_v31 = vld [vmem:[%s4888_s17 + $0x2b8] sm:$0x3]  ;;  %v350_v34 = vld [vmem:[%s4888_s17 + $0x240] sm:$0xff]  ;;  %v564_v37 = vrot.slane %v4972_v53, 1 }
  0x34   : > { %v351_v35 = vld [vmem:[%s4888_s17 + $0x248] sm:$0x3]  ;;  %v498_v36 = vrot.slane %v496_v23, 1  ;;  %v515_v38 = vshrl.u32 %v4996_v24, 16  ;;  %v517_v39 = vshll.u32 %v4996_v24, 16  ;;  %v352_v40 = vld [vmem:[%s4888_s17 + $0x250] sm:$0xff]  ;;  %v395_v43 = vmax.f32 %v359_v17, %v361_v20 }
  0x35   : > { %574 = vrot.lane.b32.xlu0 %v561_v1, %s4790_s18  ;;  %v354_v41 = vld [vmem:[%s4888_s17 + $0x260] sm:$0xff]  ;;  %v5011_v42 = vpack.c.bf16 %v437_v30, %v436_v29  ;;  %v418_v44 = vmax.f32 %v362_v25, %v364_v27  ;;  %v419_v45 = vmax.f32 %v363_v26, %v365_v31  ;;  %v353_v46 = vld [vmem:[%s4888_s17 + $0x258] sm:$0x3]  ;;  %v355_v47 = vld [vmem:[%s4888_s17 + $0x268] sm:$0x3]  ;;  %v392_v54 = vmax.f32 %v350_v34, %v352_v40 }
  0x36   : > { %540 = vrot.lane.b32.xlu1 %v506_v28, %s4791_s19  ;;  %v356_v48 = vld [vmem:[%s4888_s17 + $0x270] sm:$0xff]  ;;  %v499_v49 = vor.u32 %v498_v36, %v494_v22  ;;  %v519_v50 = vrot.slane %v517_v39, 1  ;;  %v357_v52 = vld [vmem:[%s4888_s17 + $0x278] sm:$0x3]  ;;  %v393_v55 = vmax.f32 %v351_v35, %v353_v46  ;;  %v278_v56 = vld [vmem:[%s4888_s17] sm:$0xff]  ;;  %v563_v58 = vrot.slane %v4986_v8, 1 }
  0x37   : > { %v279_v57 = vld [vmem:[%s4888_s17 + $0x8] sm:$0x3]  ;;  %v508_v59 = vshrl.u32 %v5011_v42, 16  ;;  %v510_v60 = vshll.u32 %v5011_v42, 16  ;;  %v442_v61 = vmax.f32 %v394_v33, %v418_v44  ;;  %v280_v62 = vld [vmem:[%s4888_s17 + $0x10] sm:$0xff]  ;;  %v443_v1 = vmax.f32 %v395_v43, %v419_v45  ;;  %v282_v5 = vld [vmem:[%s4888_s17 + $0x20] sm:$0xff] }
  0x38   : > { %v281_v63 = vld [vmem:[%s4888_s17 + $0x18] sm:$0x3]  ;;  %v520_v0 = vor.u32 %v519_v50, %v515_v38  ;;  %v416_v2 = vmax.f32 %v354_v41, %v356_v48  ;;  %v417_v4 = vmax.f32 %v355_v47, %v357_v52  ;;  %v283_v6 = vld [vmem:[%s4888_s17 + $0x28] sm:$0x3]  ;;  %v284_v7 = vld [vmem:[%s4888_s17 + $0x30] sm:$0xff]  ;;  %v374_v11 = vmax.f32 %v278_v56, %v280_v62 }
  0x39   : > { %538 = vrot.lane.b32.xlu0 %v499_v49, %s4791_s19  ;;  %v512_v9 = vrot.slane %v510_v60, 1  ;;  %v285_v10 = vld [vmem:[%s4888_s17 + $0x38] sm:$0x3]  ;;  %v375_v12 = vmax.f32 %v279_v57, %v281_v63  ;;  %v398_v13 = vmax.f32 %v282_v5, %v284_v7  ;;  %v366_v14 = vld [vmem:[%s4888_s17 + $0x2c0] sm:$0xff]  ;;  %v367_v15 = vld [vmem:[%s4888_s17 + $0x2c8] sm:$0x3]  ;;  %v5032_v16 = vpack.c.bf16 %v443_v1, %v442_v61 }
  0x3a   : > { %580 = vrot.lane.b32.xlu1 %v564_v37, %s4790_s18  ;;  %v440_v17 = vmax.f32 %v392_v54, %v416_v2  ;;  %v441_v19 = vmax.f32 %v393_v55, %v417_v4  ;;  %v399_v20 = vmax.f32 %v283_v6, %v285_v10  ;;  %v368_v22 = vld [vmem:[%s4888_s17 + $0x2d0] sm:$0xff]  ;;  %v369_v23 = vld [vmem:[%s4888_s17 + $0x2d8] sm:$0x3]  ;;  %v370_v25 = vld [vmem:[%s4888_s17 + $0x2e0] sm:$0xff]  ;;  %v566_v34 = vrot.slane %v4996_v24, 1 }
  0x3b   : > { %v422_v26 = vmax.f32 %v374_v11, %v398_v13  ;;  %v371_v27 = vld [vmem:[%s4888_s17 + $0x2e8] sm:$0x3]  ;;  %v372_v28 = vld [vmem:[%s4888_s17 + $0x2f0] sm:$0xff]  ;;  %v373_v29 = vld [vmem:[%s4888_s17 + $0x2f8] sm:$0x3]  ;;  %v396_v30 = vmax.f32 %v366_v14, %v368_v22  ;;  %v397_v31 = vmax.f32 %v367_v15, %v369_v23  ;;  %v513_v33 = vor.u32 %v512_v9, %v508_v59 }
  0x3c   : > { %v635_v35 = vshll.u32 %v5032_v16, 16  ;;  %v5043_v36 = vpack.c.bf16 %v441_v19, %v440_v17  ;;  %v4600_v37 = vld [vmem:[%s6012_s1 + $0x8] sm:$0x3f]   ;;  %v633_v38 = vshrl.u32 %v5032_v16, 16  ;;  %v423_v39 = vmax.f32 %v375_v12, %v399_v20  ;;  %v4601_v11 = vld [vmem:[%s6012_s1] sm:$0x3f]  }
  0x3d   : > { %578 = vrot.lane.b32.xlu0 %v563_v58, %s4790_s18  ;;  %v420_v40 = vmax.f32 %v370_v25, %v372_v28  ;;  %v421_v41 = vmax.f32 %v371_v27, %v373_v29  ;;  %v565_v43 = vrot.slane %v5011_v42, 1  ;;  %v700_v49 = vsel %vm698_vm1, %v4600_v37, 0 }
  0x3e   : > { %544 = vrot.lane.b32.xlu1 %v520_v0, %s4791_s19  ;;  %v637_v44 = vrot.slane %v635_v35, 1  ;;  %v524_v45 = vshll.u32 %v5043_v36, 16  ;;  %v5052_v46 = vpack.c.bf16 %v423_v39, %v422_v26  ;;  %v522_v50 = vshrl.u32 %v5043_v36, 16  ;;  %4321 = vmatpush3.bf16.msra.mxu0 %v700_v49 }
  0x3f   : > { %v444_v47 = vmax.f32 %v396_v30, %v420_v40  ;;  %v445_v48 = vmax.f32 %v397_v31, %v421_v41  ;;  %4342 = vmatprep.subr.bf16.mxu0 %v4788_v21  ;;  %v642_v57 = vrot.slane %v5032_v16, 1  ;;  %v567_v58 = vrot.slane %v5043_v36, 1 }
  0x40   : > { %v526_v52 = vrot.slane %v524_v45, 1  ;;  %v638_v54 = vor.u32 %v637_v44, %v633_v38  ;;  %v461_v55 = vshll.u32 %v5052_v46, 16  ;;  %v459_v59 = vshrl.u32 %v5052_v46, 16 }
  0x41   : > { %542 = vrot.lane.b32.xlu0 %v513_v33, %s4791_s19  ;;  %v5059_v56 = vpack.c.bf16 %v445_v48, %v444_v47  ;;  %v558_v60 = vrot.slane %v5052_v46, 1 }
  0x42   : > { %584 = vrot.lane.b32.xlu1 %v566_v34, %s4790_s18  ;;  %v527_v61 = vor.u32 %v526_v52, %v522_v50  ;;  %v463_v62 = vrot.slane %v461_v55, 1 }
  0x43   : > { %v881_v63 = vshll.u32 %v5059_v56, 16  ;;  %v879_v0 = vshrl.u32 %v5059_v56, 16  ;;  %v888_v4 = vrot.slane %v5059_v56, 1 }
  0x44   : > { %v464_v2 = vor.u32 %v463_v62, %v459_v59 }
  0x45   : > { %582 = vrot.lane.b32.xlu0 %v565_v43, %s4790_s18  ;;  %v883_v1 = vrot.slane %v881_v63, 1 }
  0x46   : > { %639 = vrot.lane.b32.xlu1 %v638_v54, %s4791_s19 }
  0x47   : > { %v884_v5 = vor.u32 %v883_v1, %v879_v0 }
  0x49   : > { %546 = vrot.lane.b32.xlu0 %v527_v61, %s4791_s19 }
  0x4a   : > { %643 = vrot.lane.b32.xlu1 %v642_v57, %s4790_s18 }
  0x4d   : > { %586 = vrot.lane.b32.xlu0 %v567_v58, %s4790_s18 }
  0x4e   : > { %568 = vrot.lane.b32.xlu1 %v558_v60, %s4790_s18 }
  0x51   : > { %528 = vrot.lane.b32.xlu0 %v464_v2, %s4791_s19 }
  0x52   : > { %889 = vrot.lane.b32.xlu1 %v888_v4, %s4790_s18 }
  0x55   : > { %885 = vrot.lane.b32.xlu0 %v884_v5, %s4791_s19  ;;  %s5960_s19 = scalar_lea.hbm %s6018_s7, %s4145_s14 }
  0x97   : > { %v571_v6 = vpop.permute.xlu1 %570 }
  0x9b   : > { %v531_v7 = vpop.permute.xlu0 %530  ;;  %v573_v9 = vpop.permute.xlu1 %572 }
  0x9c   : > { %v592_v10 = vsel %vm588_vm2, %v4912_v32, %v531_v7  ;;  %v803_v32 = vsel %vm698_vm1, %v4601_v11, 0  ;;  %v4604_v7 = vld [vmem:[%s6015_s4 + $0xc0] sm:$0xff]   ;;  %v4608_v11 = vld [vmem:[%s6015_s4 + $0xc8] sm:$0xff]  }
  0x9d   : > { %v5086_v15 = vsel %vm609_vm3, %v592_v10, %v571_v6  ;;  %v4603_v6 = vld [vmem:[%s6015_s4 + $0x100] sm:$0xff]  }
  0x9e   : > { %4164 = vmatprep.subr.bf16.mxu1 %v4603_v6  ;;  %v4607_v10 = vld [vmem:[%s6015_s4 + $0x180] sm:$0xff]  }
  0x9f   : > { %v533_v12 = vpop.permute.xlu0 %532  ;;  %4165 = vmatpush3.bf16.msra.mxu1 %v4604_v7  ;;  %v1076_v7 = vld [vmem:[#allocation2 + $0x60] sm:$0x8] }
  0xa0   : > { %v594_v13 = vsel %vm588_vm2, %v4927_v51, %v533_v12  ;;  %v537_v14 = vpop.permute.xlu1 %536  ;;  %v4609_v12 = vld [vmem:[%s6015_s4 + $0x1c8] sm:$0xff]  }
  0xa1   : > { %v5089_v17 = vsel %vm609_vm3, %v594_v13, %v573_v9  ;;  %v598_v51 = vsel %vm588_vm2, %v4939_v3, %v537_v14  ;;  %v4605_v9 = vld [vmem:[%s6015_s4 + $0x1c0] sm:$0xff]   ;;  %v4610_v13 = vld [vmem:[%s6015_s4 + $0x110] sm:$0xff]   ;;  %v4611_v14 = vld [vmem:[%s6015_s4 + $0x188] sm:$0xff]  }
  0xa2   : > { %v3685_v19 = vcombine.low %v5086_v15, %v5089_v17 }
  0xa3   : > { %v535_v20 = vpop.permute.xlu0 %534 }
  0xa4   : > { %4323 = vmatmul.mubr.msk.bf16.vlgmr.msra.gmra.mrb[0].mxu0 %vm682_vm4, %v3685_v19  ;;  %v577_v22 = vpop.permute.xlu1 %576  ;;  %v596_v23 = vsel %vm588_vm2, %v4952_v18, %v535_v20  ;;  %v1055_v19 = vld [vmem:[#allocation2 + $0xc] sm:$0x8]  ;;  %v4613_v20 = vld [vmem:[%s6015_s4 + $0x1d0] sm:$0xff]  }
  0xa5   : > { %4343 = vmatpush3.bf16.msra.mxu0 %v803_v32  ;;  %4326 = vmatprep.mubr.msk.bf16.mxu0 %vm4789_vm0, %v4788_v21  ;;  %v619_v26 = vsel %vm609_vm3, %v598_v51, %v577_v22  ;;  %v1056_v32 = vsel %vm5201_vm7, 0, %v1055_v19  ;;  %v4614_v22 = vld [vmem:[%s6015_s4 + $0x118] sm:$0xff]   ;;  %v4615_v51 = vld [vmem:[%s6015_s4 + $0x190] sm:$0xff]  }
  0xa6   : > { %4364 = vmatprep.subr.bf16.mxu0 %v4788_v21  ;;  %1057 = vst [vmem:[#allocation2 + $0xc] sm:$0x8] %v1056_v32  ;;  %v1085_v32 = vld [vmem:[#allocation2 + $0x8] sm:$0x1] }
  0xa7   : > { %v575_v25 = vpop.permute.xlu0 %574 }
  0xa8   : > { %v617_v27 = vsel %vm609_vm3, %v596_v23, %v575_v25  ;;  %v541_v28 = vpop.permute.xlu1 %540  ;;  %v4616_v23 = vld [vmem:[%s6015_s4 + $0xd8] sm:$0xff]  }
  0xa9   : > { %v3686_v29 = vcombine.low %v617_v27, %v619_v26  ;;  %v602_v31 = vsel %vm588_vm2, %v4972_v53, %v541_v28  ;;  %v3697_v2 = vcombine.low %v5089_v17, %v617_v27  ;;  %v4612_v17 = vld [vmem:[%s6015_s4 + $0xd0] sm:$0xff]   ;;  %v1058_v25 = vld [vmem:[#allocation2 + $0x18] sm:$0x8]  ;;  %v1094_v27 = vld [vmem:[#allocation2 + $0x2c] sm:$0x1] }
  0xaa   : > { %v4617_v28 = vld [vmem:[%s6015_s4 + $0x1d8] sm:$0xff]  }
  0xab   : > { %v539_v30 = vpop.permute.xlu0 %538 }
  0xac   : > { %4327 = vmatmul.mubr.msk.bf16.gmra.mrb[4].mxu0 %vm682_vm4, %v3686_v29  ;;  %v581_v3 = vpop.permute.xlu1 %580  ;;  %v600_v18 = vsel %vm588_vm2, %v4986_v8, %v539_v30  ;;  %v1059_v29 = vsel %vm5201_vm7, 0, %v1058_v25  ;;  %v1095_v30 = vsel %vm5223_vm10, 0, %v1094_v27 }
  0xad   : > { %4330 = vmatprep.mubr.msk.bf16.mxu0 %vm4789_vm0, %v4788_v21  ;;  %v623_v34 = vsel %vm609_vm3, %v602_v31, %v581_v3  ;;  %v4618_v3 = vld [vmem:[%s6015_s4 + $0x120] sm:$0xff]   ;;  %v4619_v31 = vld [vmem:[%s6015_s4 + $0x198] sm:$0xff]   ;;  %1060 = vst [vmem:[#allocation2 + $0x18] sm:$0x8] %v1059_v29  ;;  %1096 = vst [vmem:[#allocation2 + $0x2c] sm:$0x1] %v1095_v30 }
  0xaf   : > { %v579_v33 = vpop.permute.xlu0 %578 }
  0xb0   : > { %v621_v35 = vsel %vm609_vm3, %v600_v18, %v579_v33  ;;  %v545_v37 = vpop.permute.xlu1 %544  ;;  %v4620_v18 = vld [vmem:[%s6015_s4 + $0xe0] sm:$0xff]  }
  0xb1   : > { %v3687_v38 = vcombine.low %v621_v35, %v623_v34  ;;  %v606_v53 = vsel %vm588_vm2, %v4996_v24, %v545_v37  ;;  %v1061_v33 = vld [vmem:[#allocation2 + $0x24] sm:$0x8]  ;;  %v4622_v37 = vld [vmem:[%s6015_s4 + $0x128] sm:$0xff]  }
  0xb3   : > { %v543_v39 = vpop.permute.xlu0 %542 }
  0xb4   : > { %4331 = vmatmul.mubr.msk.bf16.gmra.mrb[8].mxu0 %vm682_vm4, %v3687_v38  ;;  %v585_v40 = vpop.permute.xlu1 %584  ;;  %v604_v8 = vsel %vm588_vm2, %v5011_v42, %v543_v39  ;;  %v4623_v38 = vld [vmem:[%s6015_s4 + $0x1a0] sm:$0xff]   ;;  %v1097_v39 = vld [vmem:[#allocation2 + $0x38] sm:$0x1] }
  0xb5   : > { %4334 = vmatprep.mubr.msk.bf16.mxu0 %vm4789_vm0, %v4788_v21  ;;  %v627_v43 = vsel %vm609_vm3, %v606_v53, %v585_v40  ;;  %v4624_v40 = vld [vmem:[%s6015_s4 + $0xe8] sm:$0xff]   ;;  %v1098_v53 = vsel %vm5223_vm10, 0, %v1097_v39 }
  0xb6   : > { %1099 = vst [vmem:[#allocation2 + $0x38] sm:$0x1] %v1098_v53 }
  0xb7   : > { %v583_v41 = vpop.permute.xlu0 %582 }
  0xb8   : > { %v625_v44 = vsel %vm609_vm3, %v604_v8, %v583_v41  ;;  %v640_v45 = vpop.permute.xlu1 %639  ;;  %v4625_v8 = vld [vmem:[%s6015_s4 + $0x1e8] sm:$0xff]   ;;  %v4626_v41 = vld [vmem:[%s6015_s4 + $0x130] sm:$0xff]  }
  0xb9   : > { %v3688_v47 = vcombine.low %v625_v44, %v627_v43  ;;  %v646_v24 = vsel %vm588_vm2, %v5032_v16, %v640_v45  ;;  %v3699_v4 = vcombine.low %v623_v34, %v625_v44  ;;  %v4621_v34 = vld [vmem:[%s6015_s4 + $0x1e0] sm:$0xff]   ;;  %v4628_v44 = vld [vmem:[%s6015_s4 + $0xf0] sm:$0xff]  }
  0xba   : > { %v4629_v45 = vld [vmem:[%s6015_s4 + $0x1f0] sm:$0xff]  }
  0xbb   : > { %v547_v48 = vpop.permute.xlu0 %546 }
  0xbc   : > { %4335 = vmatmul.mubr.msk.bf16.gmra.mrb[12].mxu0 %vm682_vm4, %v3688_v47  ;;  %v644_v49 = vpop.permute.xlu1 %643  ;;  %v608_v42 = vsel %vm588_vm2, %v5043_v36, %v547_v48  ;;  %v4602_v36 = vld [vmem:[%s6012_s1 + $0x10] sm:$0x3f]   ;;  %v4630_v47 = vld [vmem:[%s6015_s4 + $0x138] sm:$0xff]  }
  0xbd   : > { %4338 = vmatprep.mubr.msk.bf16.mxu0 %vm4789_vm0, %v4788_v21  ;;  %v648_v52 = vsel %vm609_vm3, %v646_v24, %v644_v49  ;;  %v910_v1 = vsel %vm698_vm1, %v4602_v36, 0  ;;  %v4631_v48 = vld [vmem:[%s6015_s4 + $0x1b0] sm:$0xff]   ;;  %v4632_v24 = vld [vmem:[%s6015_s4 + $0xf8] sm:$0xff]   ;;  %v1091_v36 = vld [vmem:[#allocation2 + $0x20] sm:$0x1] }
  0xbe   : > { %v1064_v49 = vld [vmem:[#allocation2 + $0x30] sm:$0x8] }
  0xbf   : > { %v587_v50 = vpop.permute.xlu0 %586 }
  0xc0   : > { %v629_v54 = vsel %vm609_vm3, %v608_v42, %v587_v50  ;;  %v569_v55 = vpop.permute.xlu1 %568  ;;  %v1065_v42 = vsel %vm5201_vm7, 0, %v1064_v49  ;;  %v4633_v50 = vld [vmem:[%s6015_s4 + $0x1f8] sm:$0xff]  }
  0xc1   : > { %v3689_v57 = vcombine.low %v629_v54, %v648_v52  ;;  %v3700_v5 = vcombine.low %v627_v43, %v629_v54  ;;  %v4627_v43 = vld [vmem:[%s6015_s4 + $0x1a8] sm:$0xff]   ;;  %1066 = vst [vmem:[#allocation2 + $0x30] sm:$0x8] %v1065_v42  ;;  %v1088_v54 = vld [vmem:[#allocation2 + $0x14] sm:$0x1] }
  0xc3   : > { %v529_v58 = vpop.permute.xlu0 %528 }
  0xc4   : > { %v590_v59 = vsel %vm588_vm2, %v5052_v46, %v529_v58  ;;  %4339 = vmatmul.mubr.msk.bf16.gmra.mrb[16].mxu0 %vm682_vm4, %v3689_v57  ;;  %v890_v16 = vpop.permute.xlu1 %889  ;;  %v4637_v57 = vld [vmem:[%s6015_s4 + $0x1b8] sm:$0xff]  }
  0xc5   : > { %4344 = vmatprep.mubr.msk.bf16.mxu0 %vm4789_vm0, %v4788_v21  ;;  %v611_v60 = vsel %vm609_vm3, %v590_v59, %v569_v55  ;;  %v5291_v55 = vld [vmem:[%s6015_s4 + $0x140] sm:$0xff]   ;;  %v4792_v59 = vmov 0.0|0.0  }
  0xc6   : > { %v3696_v46 = vcombine.low %v611_v60, %v5086_v15  ;;  %1134 = vst [vmem:[#allocation2 + $0x70] sm:$0xf] %v4792_v59  ;;  %1125 = vst [vmem:[#allocation2 + $0x4] sm:$0xf] %v4792_v59  ;;  %v1092_v60 = vsel %vm5223_vm10, 0, %v1091_v36 }
  0xc7   : > { %v886_v61 = vpop.permute.xlu0 %885  ;;  %1093 = vst [vmem:[#allocation2 + $0x20] sm:$0x1] %v1092_v60 }
  0xc8   : > { %v892_v62 = vsel %vm588_vm2, %v5059_v56, %v886_v61  ;;  %v3698_v56 = vcombine.low %v619_v26, %v621_v35  ;;  %v1062_v35 = vsel %vm5201_vm7, 0, %v1061_v33  ;;  %v5306_v61 = vld [vmem:[%s6015_s4 + $0x200] sm:$0xff]  }
  0xc9   : > { %v894_v63 = vsel %vm609_vm3, %v892_v62, %v890_v16  ;;  %1063 = vst [vmem:[#allocation2 + $0x24] sm:$0x8] %v1062_v35  ;;  %v1089_v16 = vsel %vm5223_vm10, 0, %v1088_v54  ;;  %v1067_v62 = vld [vmem:[#allocation2 + $0x3c] sm:$0x8] }
  0xca   : > { %v3709_v0 = vcombine.low %v648_v52, %v894_v63  ;;  %v1100_v52 = vld [vmem:[#allocation2 + $0x44] sm:$0x1]  ;;  %1090 = vst [vmem:[#allocation2 + $0x14] sm:$0x1] %v1089_v16  ;;  %v1068_v63 = vsel %vm5201_vm7, 0, %v1067_v62 }
  0xcb   : > { %v1101_v58 = vsel %vm5223_vm10, 0, %v1100_v52  ;;  %1069 = vst [vmem:[#allocation2 + $0x3c] sm:$0x8] %v1068_v63 }
  0xcc   : > { %4345 = vmatmul.mubr.msk.bf16.vlgmr.msra.gmra.mrb[0].mxu0 %vm682_vm4, %v3696_v46  ;;  %1102 = vst [vmem:[#allocation2 + $0x44] sm:$0x1] %v1101_v58  ;;  %v1070_v46 = vld [vmem:[#allocation2 + $0x48] sm:$0x8] }
  0xcd   : > { %4365 = vmatpush3.bf16.msra.mxu0 %v910_v1  ;;  %4348 = vmatprep.mubr.msk.bf16.mxu0 %vm4789_vm0, %v4788_v21  ;;  %v1073_v1 = vld [vmem:[#allocation2 + $0x54] sm:$0x8] }
  0xce   : > { %4268 = vmatprep.subr.bf16.mxu0 %v4605_v9  ;;  %v1077_v9 = vsel %vm5201_vm7, 0, %v1076_v7 }
  0xcf   : > { %1078 = vst [vmem:[#allocation2 + $0x60] sm:$0x8] %v1077_v9 }
  0xd4   : > { %4349 = vmatmul.mubr.msk.bf16.gmra.mrb[4].mxu0 %vm682_vm4, %v3697_v2 }
  0xd5   : > { %4352 = vmatprep.mubr.msk.bf16.mxu0 %vm4789_vm0, %v4788_v21 }
  0xdc   : > { %4353 = vmatmul.mubr.msk.bf16.gmra.mrb[8].mxu0 %vm682_vm4, %v3698_v56 }
  0xdd   : > { %4356 = vmatprep.mubr.msk.bf16.mxu0 %vm4789_vm0, %v4788_v21 }
  0xe4   : > { %4357 = vmatmul.mubr.msk.bf16.gmra.mrb[12].mxu0 %vm682_vm4, %v3699_v4 }
  0xe5   : > { %4360 = vmatprep.mubr.msk.bf16.mxu0 %vm4789_vm0, %v4788_v21 }
  0xec   : > { %4361 = vmatmul.mubr.msk.bf16.gmra.mrb[16].mxu0 %vm682_vm4, %v3700_v5 }
  0xed   : > { %4366 = vmatprep.mubr.msk.bf16.mxu0 %vm4789_vm0, %v4788_v21 }
  0xf4   : > { %4367 = vmatmul.mubr.msk.bf16.vlgmr.msra.gmra.mrb[0].mxu0 %vm682_vm4, %v3697_v2  ;;  %v1074_v2 = vsel %vm5201_vm7, 0, %v1073_v1 }
  0xf5   : > { %4370 = vmatprep.mubr.msk.bf16.mxu0 %vm4789_vm0, %v4788_v21  ;;  %4269 = vmatpush3.bf16.msra.mxu0 %v4607_v10  ;;  %1075 = vst [vmem:[#allocation2 + $0x54] sm:$0x8] %v1074_v2 }
  0xf6   : > { %4270 = vmatprep.subr.bf16.mxu0 %v4609_v12 }
  0xf9   : > { %4271 = vmatpush3.bf16.msra.mxu0 %v4611_v14 }
  0xfa   : > { %4272 = vmatprep.subr.bf16.mxu0 %v4613_v20  ;;  %v1086_v20 = vsel %vm5223_vm10, 0, %v1085_v32 }
  0xfb   : > { %1087 = vst [vmem:[#allocation2 + $0x8] sm:$0x1] %v1086_v20 }
  0xfc   : > { %4371 = vmatmul.mubr.msk.bf16.gmra.mrb[4].mxu0 %vm682_vm4, %v3698_v56  ;;  %v1109_v56 = vld [vmem:[#allocation2 + $0x68] sm:$0x1] }
  0xfd   : > { %4374 = vmatprep.mubr.msk.bf16.mxu0 %vm4789_vm0, %v4788_v21  ;;  %4273 = vmatpush3.bf16.msra.mxu0 %v4615_v51  ;;  %v1136_v51 = vld [vmem:[#allocation2 + $0x4] sm:$0xf] }
  0xfe   : > { %4274 = vmatprep.subr.bf16.mxu0 %v4617_v28 }
 0x101   : > { %4275 = vmatpush3.bf16.msra.mxu0 %v4619_v31 }
 0x102   : > { %4276 = vmatprep.subr.bf16.mxu0 %v4621_v34 }
 0x104   : > { %4375 = vmatmul.mubr.msk.bf16.gmra.mrb[8].mxu0 %vm682_vm4, %v3699_v4  ;;  %v1112_v4 = vld [vmem:[#allocation2 + $0x74] sm:$0x1] }
 0x105   : > { %4378 = vmatprep.mubr.msk.bf16.mxu0 %vm4789_vm0, %v4788_v21  ;;  %4277 = vmatpush3.bf16.msra.mxu0 %v4623_v38  ;;  %v1113_v6 = vsel %vm5223_vm10, 0, %v1112_v4 }
 0x106   : > { %4278 = vmatprep.subr.bf16.mxu0 %v4625_v8  ;;  %1114 = vst [vmem:[#allocation2 + $0x74] sm:$0x1] %v1113_v6 }
 0x109   : > { %4279 = vmatpush3.bf16.msra.mxu0 %v4627_v43  ;;  %v1151_v43 = vld [vmem:[#allocation2 + $0x8] sm:$0x1] }
 0x10a   : > { %4280 = vmatprep.subr.bf16.mxu0 %v4629_v45 }
 0x10c   : > { %4379 = vmatmul.mubr.msk.bf16.gmra.mrb[12].mxu0 %vm682_vm4, %v3700_v5  ;;  %v1110_v5 = vsel %vm5223_vm10, 0, %v1109_v56 }
 0x10d   : > { %4382 = vmatprep.mubr.msk.bf16.mxu0 %vm4789_vm0, %v4788_v21  ;;  %v4606_v21 = vld [vmem:[%s6015_s4 + $0x108] sm:$0xff]   ;;  %4281 = vmatpush3.bf16.msra.mxu0 %v4631_v48  ;;  %1111 = vst [vmem:[#allocation2 + $0x68] sm:$0x1] %v1110_v5  ;;  %v2767_v54 = vld [vmem:[#allocation2 + $0x74] sm:$0x1] }
 0x10e   : > { %4166 = vmatprep.subr.bf16.mxu1 %v4606_v21  ;;  %4282 = vmatprep.subr.bf16.mxu0 %v4633_v50  ;;  %v1079_v21 = vld [vmem:[#allocation2 + $0x6c] sm:$0x8] }
 0x10f   : > { %4167 = vmatpush3.bf16.msra.mxu1 %v4608_v11  ;;  %v1080_v10 = vsel %vm5201_vm7, 0, %v1079_v21  ;;  %v1052_v11 = vld [vmem:[#allocation2] sm:$0x8] }
 0x110   : > { %4168 = vmatprep.subr.bf16.mxu1 %v4610_v13  ;;  %1081 = vst [vmem:[#allocation2 + $0x6c] sm:$0x8] %v1080_v10  ;;  %v1053_v12 = vsel %vm5201_vm7, 0, %v1052_v11  ;;  %v1103_v13 = vld [vmem:[#allocation2 + $0x50] sm:$0x1] }
 0x111   : > { %4283 = vmatpush3.bf16.msra.mxu0 %v4637_v57  ;;  %1054 = vst [vmem:[#allocation2] sm:$0x8] %v1053_v12  ;;  %v1104_v14 = vsel %vm5223_vm10, 0, %v1103_v13  ;;  %v1634_v12 = vld [vmem:[#allocation2 + $0x14] sm:$0x1] }
 0x112   : > { %4434 = vmatprep.subr.bf16.mxu0 %v5306_v61  ;;  %1105 = vst [vmem:[#allocation2 + $0x50] sm:$0x1] %v1104_v14 }
 0x113   : > { %4169 = vmatpush3.bf16.msra.mxu1 %v4612_v17  ;;  %v1106_v17 = vld [vmem:[#allocation2 + $0x5c] sm:$0x1] }
 0x114   : > { %4383 = vmatmul.mubr.msk.bf16.gmra.mrb[16].mxu0 %vm682_vm4, %v3709_v0  ;;  %4170 = vmatprep.subr.bf16.mxu1 %v4614_v22  ;;  %v1071_v0 = vsel %vm5201_vm7, 0, %v1070_v46  ;;  %v1107_v19 = vsel %vm5223_vm10, 0, %v1106_v17  ;;  %v2759_v22 = vld [vmem:[#allocation2 + $0x70] sm:$0xf] }
 0x115   : > { %1072 = vst [vmem:[#allocation2 + $0x48] sm:$0x8] %v1071_v0  ;;  %1108 = vst [vmem:[#allocation2 + $0x5c] sm:$0x1] %v1107_v19  ;;  %v3989_v15 = vcombine.low %v2759_v22, %v2759_v22  ;;  %v3997_v63 = vcombine.low %v2759_v22, %v2767_v54 }
 0x117   : > { %4171 = vmatpush3.bf16.msra.mxu1 %v4616_v23  ;;  %v3718_v23 = vcombine.low %v1136_v51, %v1136_v51  ;;  %v2865_v25 = vshrl.u32 %v3989_v15, 16  ;;  %v2868_v27 = vshll.u32 %v3989_v15, 16  ;;  %v2758_v8 = vld [vmem:[#allocation2 + $0x6c] sm:$0x8]  ;;  %v5349_v11 = vrot.slane %v3997_v63, 5 }
 0x118   : > { %4172 = vmatprep.subr.bf16.mxu1 %v4618_v3  ;;  %v1152_v15 = vld [vmem:[#allocation2 + $0x14] sm:$0x1]  ;;  %v1618_v63 = vld [vmem:[#allocation2 + $0xc] sm:$0x8] }
 0x119   : > { %v1200_v28 = vshrl.u32 %v3718_v23, 16  ;;  %v1203_v29 = vshll.u32 %v3718_v23, 16  ;;  %v2867_v30 = vrot.slane %v2865_v25, 4  ;;  %v2870_v3 = vrot.slane %v2868_v27, 5 }
 0x11b   : > { %4173 = vmatpush3.bf16.msra.mxu1 %v4620_v18  ;;  %v5334_v18 = vld [vmem:[%s6013_s2] ss:$0 sm:$0xff]  ;;  %v1202_v26 = vrot.slane %v1200_v28, 4  ;;  %v1205_v34 = vrot.slane %v1203_v29, 5 }
 0x11c   : > { %4174 = vmatprep.subr.bf16.mxu1 %v4622_v37  ;;  %v5339_v37 = vld [vmem:[%s6014_s3] ss:$0 sm:$0xff] }
 0x11f   : > { %4175 = vmatpush3.bf16.msra.mxu1 %v4624_v40  ;;  %v2871_v40 = vor.u32 %v2870_v3, %v2867_v30 }
 0x120   : > { %4176 = vmatprep.subr.bf16.mxu1 %v4626_v41  ;;  %v1206_v41 = vor.u32 %v1205_v34, %v1202_v26 }
 0x121   : > { %v4033_v49 = vcombine.low %v2758_v8, %v2871_v40 }
 0x122   : > { %v3737_v58 = vsel %vm3736_vm11, %v1136_v51, %v1206_v41 }
 0x123   : > { %4177 = vmatpush3.bf16.msra.mxu1 %v4628_v44  ;;  %v1135_v44 = vld [vmem:[#allocation2] sm:$0x8]  ;;  %v1367_v46 = vshrl.u32 %v3737_v58, 16  ;;  %v3151_v56 = vshrl.u32 %v4033_v49, 16  ;;  %v1370_v14 = vshll.u32 %v3737_v58, 16 }
 0x124   : > { %4178 = vmatprep.subr.bf16.mxu1 %v4630_v47  ;;  %v4036_v47 = vsel %vm3736_vm11, %v2759_v22, %v2871_v40  ;;  %v3734_v57 = vcombine.low %v1135_v44, %v1206_v41 }
 0x125   : > { %v3156_v16 = vshrl.u32 %v4036_v47, 16  ;;  %v3159_v6 = vshll.u32 %v4036_v47, 16  ;;  %v1369_v13 = vrot.slane %v1367_v46, 7  ;;  %v4052_v22 = vrot.slane %v3151_v56, 11 }
 0x126   : > { %v1362_v4 = vshrl.u32 %v3734_v57, 16 }
 0x127   : > { %4179 = vmatpush3.bf16.msra.mxu1 %v4632_v24  ;;  %v3726_v24 = vcombine.low %v1136_v51, %v1151_v43  ;;  %v3158_v5 = vrot.slane %v3156_v16, 7 }
 0x128   : > { %4386 = vmatprep.subr.bf16.mxu1 %v5291_v55  ;;  %v3774_v51 = vrot.slane %v1362_v4, 11 }
 0x129   : > { %v1287_v0 = vrot.slane %v3726_v24, 5  ;;  %v3161_v27 = vor.u32 %v3159_v6, %v3158_v5  ;;  %v4721_v24 = vld [vmem:[%s6015_s4 + $0x228] sm:$0xff]  }
 0x12b   : > { %v3735_v7 = vcombine.low %v1287_v0, %v1287_v0  ;;  %v5351_v17 = vcombine.high %v1287_v0, %v1287_v0  ;;  %v5379_v58 = vsel %vm5369_vm13, %v4052_v22, %v3161_v27 }
 0x12d   : > { %v5354_v29 = vshrl.u32 %v3735_v7, 16 }
 0x12f   : > { %v3775_v47 = vrot.slane %v5354_v29, 11  ;;  %v4705_v29 = vld [vmem:[%s6015_s4 + $0xa8] sm:$0xff]  }
 0x1c7   : > { %v946_v31 = vpop.f32.mrb[0].mxu0 }
 0x1c8   : > { %v4368_v33 = vpop.f32.mrb[1].mxu0 }
 0x1c9   : > { %v949_v35 = vpop.f32.mrb[2].mxu0 }
 0x1ca   : > { %v1003_v38 = vmul.f32 %v5334_v18, %v949_v35  ;;  %v4369_v39 = vpop.f32.mrb[3].mxu0  ;;  %v1372_v35 = vor.u32 %v1370_v14, %v1369_v13 }
 0x1cb   : > { %v1380_v39 = vshrl.u32 %v5351_v17, 16 }
 0x1cc   : > { %v1020_v53 = vadd.f32 %v5339_v37, %v1003_v38 }
 0x1ce   : > { %v1030_v45 = vmax.f32 %v1020_v53, 0.0 }
 0x1cf   : > { %v954_v48 = vpop.f32.mrb[4].mxu0 }
 0x1d0   : > { %v1116_v42 = vpack.c.bf16 %v1030_v45, %v1030_v45  ;;  %v1004_v50 = vmul.f32 %v5334_v18, %v954_v48  ;;  %v4372_v52 = vpop.f32.mrb[5].mxu0 }
 0x1d1   : > { %v957_v59 = vpop.f32.mrb[6].mxu0 }
 0x1d2   : > { %1126 = vst [vmem:[#allocation2 + $0x10] sm:$0xf] %v1116_v42  ;;  %v1021_v36 = vadd.f32 %v5339_v37, %v1004_v50  ;;  %v1005_v60 = vmul.f32 %v5334_v18, %v957_v59  ;;  %v4373_v62 = vpop.f32.mrb[7].mxu0  ;;  %v5383_v59 = vsel %vm5369_vm13, %v3774_v51, %v1372_v35 }
 0x1d4   : > { %v1031_v1 = vmax.f32 %v1021_v36, 0.0  ;;  %v1022_v2 = vadd.f32 %v5339_v37, %v1005_v60 }
 0x1d6   : > { %v1117_v9 = vpack.c.bf16 %v1031_v1, %v1031_v1  ;;  %v1032_v21 = vmax.f32 %v1022_v2, 0.0 }
 0x1d7   : > { %v962_v10 = vpop.f32.mrb[8].mxu0 }
 0x1d8   : > { %1127 = vst [vmem:[#allocation2 + $0x1c] sm:$0xf] %v1117_v9  ;;  %v1118_v19 = vpack.c.bf16 %v1032_v21, %v1032_v21  ;;  %v1006_v32 = vmul.f32 %v5334_v18, %v962_v10  ;;  %v4376_v20 = vpop.f32.mrb[9].mxu0 }
 0x1d9   : > { %v965_v23 = vpop.f32.mrb[10].mxu0  ;;  %v1619_v25 = vld [vmem:[#allocation2 + $0x10] sm:$0xf] }
 0x1da   : > { %v1138_v28 = vld [vmem:[#allocation2 + $0x10] sm:$0xf]  ;;  %1128 = vst [vmem:[#allocation2 + $0x28] sm:$0xf] %v1118_v19  ;;  %v1023_v30 = vadd.f32 %v5339_v37, %v1006_v32  ;;  %v1007_v3 = vmul.f32 %v5334_v18, %v965_v23  ;;  %v4377_v31 = vpop.f32.mrb[11].mxu0  ;;  %v3790_v33 = vcombine.low %v1619_v25, %v1619_v25  ;;  %v3798_v26 = vcombine.low %v1619_v25, %v1634_v12 }
 0x1db   : > { %v5358_v34 = vcombine.low %v1138_v28, %v1138_v28  ;;  %v3727_v38 = vcombine.low %v1138_v28, %v1152_v15  ;;  %v1620_v23 = vld [vmem:[#allocation2 + $0x18] sm:$0x8] }
 0x1dc   : > { %v1033_v40 = vmax.f32 %v1023_v30, 0.0  ;;  %v1024_v53 = vadd.f32 %v5339_v37, %v1007_v3  ;;  %v1683_v8 = vshrl.u32 %v3790_v33, 16  ;;  %v1686_v41 = vshll.u32 %v3790_v33, 16 }
 0x1dd   : > { %v5362_v43 = vrot.slane %v3798_v26, 5  ;;  %v1208_v44 = vshrl.u32 %v5358_v34, 16  ;;  %v1211_v45 = vshll.u32 %v5358_v34, 16  ;;  %v5385_v16 = vrot.slane %v3727_v38, 5 }
 0x1de   : > { %v1119_v48 = vpack.c.bf16 %v1033_v40, %v1033_v40  ;;  %v1034_v49 = vmax.f32 %v1024_v53, 0.0  ;;  %v1685_v42 = vrot.slane %v1683_v8, 4  ;;  %v1688_v50 = vrot.slane %v1686_v41, 5 }
 0x1df   : > { %v970_v52 = vpop.f32.mrb[12].mxu0  ;;  %v5373_v54 = vld [vmem:[#allocation2 + $0x1c] sm:$0xf]  ;;  %v3807_v4 = vcombine.low %v5362_v43, %v5362_v43  ;;  %v5398_v5 = vcombine.high %v5362_v43, %v5362_v43  ;;  %v5400_v6 = vrot.slane %v1208_v44, 4 }
 0x1e0   : > { %v5375_v57 = vld [vmem:[#allocation2 + $0x1c] sm:$0xf]  ;;  %1129 = vst [vmem:[#allocation2 + $0x34] sm:$0xf] %v1119_v48  ;;  %v1120_v36 = vpack.c.bf16 %v1034_v49, %v1034_v49  ;;  %v1008_v60 = vmul.f32 %v5334_v18, %v970_v52  ;;  %v4380_v62 = vpop.f32.mrb[13].mxu0  ;;  %v3791_v46 = vcombine.low %v5373_v54, %v5373_v54  ;;  %v1689_v0 = vor.u32 %v1688_v50, %v1685_v42 }
 0x1e1   : > { %v973_v1 = vpop.f32.mrb[14].mxu0  ;;  %v5390_v2 = vld [vmem:[#allocation2 + $0x28] sm:$0xf]  ;;  %v3982_v56 = vcombine.low %v5375_v57, %v5375_v57 }
 0x1e2   : > { %1130 = vst [vmem:[#allocation2 + $0x40] sm:$0xf] %v1120_v36  ;;  %v1025_v7 = vadd.f32 %v5339_v37, %v1008_v60  ;;  %v1009_v9 = vmul.f32 %v5334_v18, %v973_v1  ;;  %v4381_v21 = vpop.f32.mrb[15].mxu0  ;;  %v1691_v10 = vshrl.u32 %v3791_v46, 16  ;;  %v1694_v12 = vshll.u32 %v3791_v46, 16 }
 0x1e3   : > { %v3806_v13 = vcombine.low %v1618_v63, %v1689_v0  ;;  %v3809_v14 = vsel %vm3736_vm11, %v1619_v25, %v1689_v0  ;;  %v3983_v19 = vcombine.low %v5390_v2, %v5390_v2  ;;  %v2809_v32 = vshrl.u32 %v3982_v56, 16  ;;  %v5411_v50 = vld [vmem:[#allocation2 + $0x28] sm:$0xf] }
 0x1e4   : > { %v1035_v20 = vmax.f32 %v1025_v7, 0.0  ;;  %v1026_v22 = vadd.f32 %v5339_v37, %v1009_v9  ;;  %v1693_v51 = vrot.slane %v1691_v10, 4  ;;  %v1696_v15 = vrot.slane %v1694_v12, 5  ;;  %v2746_v12 = vld [vmem:[#allocation2 + $0x24] sm:$0x8] }
 0x1e5   : > { %v1843_v27 = vshrl.u32 %v3806_v13, 16  ;;  %v1848_v28 = vshrl.u32 %v3809_v14, 16  ;;  %v1851_v30 = vshll.u32 %v3809_v14, 16  ;;  %v2811_v3 = vrot.slane %v2809_v32, 4  ;;  %v5676_v34 = vld [vmem:[#allocation2 + $0x28] sm:$0xf] }
 0x1e6   : > { %v1121_v31 = vpack.c.bf16 %v1035_v20, %v1035_v20  ;;  %v1036_v33 = vmax.f32 %v1026_v22, 0.0  ;;  %v1697_v26 = vor.u32 %v1696_v15, %v1693_v51  ;;  %v2812_v35 = vshll.u32 %v3982_v56, 16 }
 0x1e7   : > { %v978_v38 = vpop.f32.mrb[16].mxu0  ;;  %v3846_v25 = vrot.slane %v1843_v27, 11  ;;  %v1850_v40 = vrot.slane %v1848_v28, 7  ;;  %v2817_v53 = vshrl.u32 %v3983_v19, 16  ;;  %v2820_v8 = vshll.u32 %v3983_v19, 16 }
 0x1e8   : > { %1131 = vst [vmem:[#allocation2 + $0x4c] sm:$0xf] %v1121_v31  ;;  %v1122_v41 = vpack.c.bf16 %v1036_v33, %v1036_v33  ;;  %v1010_v44 = vmul.f32 %v5334_v18, %v978_v38  ;;  %v4384_v48 = vpop.f32.mrb[17].mxu0  ;;  %v3811_v49 = vcombine.low %v1620_v23, %v1697_v26  ;;  %v3814_v42 = vsel %vm3736_vm11, %v5373_v54, %v1697_v26  ;;  %v5413_v46 = vld [vmem:[#allocation2 + $0x34] sm:$0xf] }
 0x1e9   : > { %v981_v52 = vpop.f32.mrb[18].mxu0  ;;  %v1853_v36 = vor.u32 %v1851_v30, %v1850_v40  ;;  %v1874_v60 = vshrl.u32 %v3814_v42, 16  ;;  %v1877_v62 = vshll.u32 %v3814_v42, 16  ;;  %v2814_v63 = vrot.slane %v2812_v35, 5  ;;  %v2744_v18 = vld [vmem:[#allocation2 + $0x18] sm:$0x8] }
 0x1ea   : > { %1132 = vst [vmem:[#allocation2 + $0x58] sm:$0xf] %v1122_v41  ;;  %v1027_v0 = vadd.f32 %v5339_v37, %v1010_v44  ;;  %v4385_v1 = vpop.f32.mrb[19].mxu0  ;;  %v1869_v56 = vshrl.u32 %v3811_v49, 16  ;;  %v2819_v7 = vrot.slane %v2817_v53, 4  ;;  %v2822_v9 = vrot.slane %v2820_v8, 5 }
 0x1eb   : > { %v1854_v21 = vsel %vm5369_vm13, %v3846_v25, %v1853_v36  ;;  %v1876_v10 = vrot.slane %v1874_v60, 7  ;;  %v2815_v13 = vor.u32 %v2814_v63, %v2811_v3  ;;  %v3792_v14 = vcombine.low %v5411_v50, %v5411_v50  ;;  %v1636_v38 = vld [vmem:[#allocation2 + $0x2c] sm:$0x1]  ;;  %v5431_v44 = vld [vmem:[#allocation2 + $0x20] sm:$0x1] }
 0x1ec   : > { %v1037_v19 = vmax.f32 %v1027_v0, 0.0  ;;  %v3848_v32 = vrot.slane %v1869_v56, 11  ;;  %v2823_v20 = vor.u32 %v2822_v9, %v2819_v7  ;;  %v3793_v37 = vcombine.low %v5413_v46, %v5413_v46  ;;  %v4641_v41 = vld [vmem:[%s6015_s4 + $0x148] sm:$0xff]   ;;  %v5433_v36 = vld [vmem:[#allocation2 + $0x34] sm:$0xf] }
 0x1ed   : > { %v1879_v22 = vor.u32 %v1877_v62, %v1876_v10  ;;  %v3998_v51 = vcombine.low %v2744_v18, %v2815_v13  ;;  %v4001_v15 = vsel %vm3736_vm11, %v5375_v57, %v2815_v13  ;;  %v1699_v23 = vshrl.u32 %v3792_v14, 16  ;;  %v5435_v1 = vld [vmem:[#allocation2 + $0x20] sm:$0x1]  ;;  %v1637_v10 = vld [vmem:[#allocation2 + $0x38] sm:$0x1] }
 0x1ee   : > { %v1123_v27 = vpack.c.bf16 %v1037_v19, %v1037_v19  ;;  %v4003_v28 = vcombine.low %v2746_v12, %v2823_v20  ;;  %v4006_v30 = vsel %vm3736_vm11, %v5390_v2, %v2823_v20  ;;  %v2974_v3 = vshrl.u32 %v4001_v15, 16  ;;  %v5438_v9 = vld [vmem:[#allocation2 + $0x40] sm:$0xf] }
 0x1ef   : > { %v1880_v31 = vsel %vm5369_vm13, %v3848_v32, %v1879_v22  ;;  %v2969_v33 = vshrl.u32 %v3998_v51, 16  ;;  %v2977_v26 = vshll.u32 %v4001_v15, 16  ;;  %v3000_v35 = vshrl.u32 %v4006_v30, 16  ;;  %v4647_v22 = vld [vmem:[%s6015_s4 + $0x150] sm:$0xff]  }
 0x1f0   : > { %1133 = vst [vmem:[#allocation2 + $0x64] sm:$0xf] %v1123_v27  ;;  %v3910_v25 = vcombine.low %v1854_v21, %v1880_v31  ;;  %v3911_v40 = vcombine.high %v1854_v21, %v1880_v31  ;;  %v2976_v53 = vrot.slane %v2974_v3, 7  ;;  %v2995_v8 = vshrl.u32 %v4003_v28, 16  ;;  %v4642_v28 = vld [vmem:[%s6015_s4 + $0x208] sm:$0xff]  }
 0x1f1   : > { %v4038_v48 = vrot.slane %v2969_v33, 11  ;;  %v3002_v49 = vrot.slane %v3000_v35, 7  ;;  %v3003_v42 = vshll.u32 %v4006_v30, 16  ;;  %v1701_v52 = vrot.slane %v1699_v23, 4 }
 0x1f2   : > { %2323 = vmatprep.mubr.bf16.mxu1 %v3911_v40  ;;  %v2979_v60 = vor.u32 %v2977_v26, %v2976_v53  ;;  %v4040_v62 = vrot.slane %v2995_v8, 11  ;;  %v1702_v63 = vshll.u32 %v3792_v14, 16  ;;  %v1707_v0 = vshrl.u32 %v3793_v37, 16 }
 0x1f3   : > { %2324 = vmatmul.mubr.bf16.vlgmr.msra.gmra.mrb[0].mxu1 %v3910_v25  ;;  %v3005_v56 = vor.u32 %v3003_v42, %v3002_v49  ;;  %v1710_v18 = vshll.u32 %v3793_v37, 16  ;;  %v3800_v7 = vcombine.low %v5411_v50, %v1636_v38  ;;  %v3799_v21 = vcombine.low %v5373_v54, %v5431_v44  ;;  %v1622_v37 = vld [vmem:[#allocation2 + $0x24] sm:$0x8]  ;;  %v2762_v38 = vld [vmem:[#allocation2 + $0x38] sm:$0x1] }
 0x1f4   : > { %4387 = vmatpush3.bf16.msra.mxu1 %v5291_v55  ;;  %v1704_v12 = vrot.slane %v1702_v63, 5  ;;  %v1709_v13 = vrot.slane %v1707_v0, 4  ;;  %v3984_v14 = vcombine.low %v5433_v36, %v5433_v36  ;;  %v5448_v19 = vshrl.u32 %v3807_v4, 16  ;;  %v1624_v4 = vld [vmem:[#allocation2 + $0x30] sm:$0x8] }
 0x1f5   : > { %v2980_v32 = vsel %vm5369_vm13, %v4038_v48, %v2979_v60  ;;  %v3006_v20 = vsel %vm5369_vm13, %v4040_v62, %v3005_v56  ;;  %4388 = vmatprep.subr.bf16.mxu1 %v4641_v41  ;;  %v1712_v55 = vrot.slane %v1710_v18, 5  ;;  %v3990_v51 = vcombine.low %v5375_v57, %v5435_v1  ;;  %v2763_v42 = vld [vmem:[#allocation2 + $0x44] sm:$0x1]  ;;  %v2748_v62 = vld [vmem:[#allocation2 + $0x30] sm:$0x8] }
 0x1f6   : > { %v4102_v15 = vcombine.low %v2980_v32, %v3006_v20  ;;  %v4103_v43 = vcombine.high %v2980_v32, %v3006_v20  ;;  %v1705_v23 = vor.u32 %v1704_v12, %v1701_v52  ;;  %v3985_v27 = vcombine.low %v5438_v9, %v5438_v9 }
 0x1f7   : > { %v1713_v30 = vor.u32 %v1712_v55, %v1709_v13  ;;  %v3801_v3 = vcombine.low %v5413_v46, %v1637_v10  ;;  %v5465_v31 = vrot.slane %v3800_v7, 5  ;;  %v2825_v33 = vshrl.u32 %v3984_v14, 16  ;;  %v4652_v7 = vld [vmem:[%s6015_s4 + $0x210] sm:$0xff]  }
 0x1f8   : > { %3449 = vmatprep.mubr.bf16.mxu0 %v4103_v43  ;;  %4389 = vmatpush3.bf16.msra.mxu1 %v4641_v41  ;;  %v3816_v26 = vcombine.low %v1622_v37, %v1705_v23  ;;  %v3819_v35 = vsel %vm3736_vm11, %v5411_v50, %v1705_v23  ;;  %v2828_v25 = vshll.u32 %v3984_v14, 16  ;;  %v2833_v40 = vshrl.u32 %v3985_v27, 16  ;;  %v4653_v41 = vld [vmem:[%s6015_s4 + $0x158] sm:$0xff]   ;;  %v5479_v14 = vld [vmem:[#allocation2 + $0x40] sm:$0xf] }
 0x1f9   : > { %3450 = vmatmul.mubr.bf16.vlgmr.msra.gmra.mrb[20].mxu0 %v4102_v15  ;;  %v3821_v53 = vcombine.low %v1624_v4, %v1713_v30  ;;  %v3824_v8 = vsel %vm3736_vm11, %v5413_v46, %v1713_v30  ;;  %v1900_v48 = vshrl.u32 %v3819_v35, 16  ;;  %v1903_v49 = vshll.u32 %v3819_v35, 16  ;;  %4390 = vmatprep.subr.bf16.mxu1 %v4647_v22  ;;  %v4657_v15 = vld [vmem:[%s6015_s4 + $0x160] sm:$0xff]  }
 0x1fa   : > { %4435 = vmatpush3.bf16.msra.mxu0 %v5306_v61  ;;  %v1895_v52 = vshrl.u32 %v3816_v26, 16  ;;  %v1926_v50 = vshrl.u32 %v3824_v8, 16  ;;  %v1929_v60 = vshll.u32 %v3824_v8, 16  ;;  %v2827_v63 = vrot.slane %v2825_v33, 4 }
 0x1fb   : > { %4436 = vmatprep.subr.bf16.mxu0 %v4642_v28  ;;  %v1902_v0 = vrot.slane %v1900_v48, 7  ;;  %v1921_v56 = vshrl.u32 %v3821_v53, 16  ;;  %v2830_v18 = vrot.slane %v2828_v25, 5  ;;  %v2835_v46 = vrot.slane %v2833_v40, 4  ;;  %v5504_v53 = vld [vmem:[#allocation2 + $0x4c] sm:$0xf] }
 0x1fc   : > { %v3850_v10 = vrot.slane %v1895_v52, 11  ;;  %v1928_v12 = vrot.slane %v1926_v50, 7  ;;  %4391 = vmatpush3.bf16.msra.mxu1 %v4647_v22  ;;  %v2836_v13 = vshll.u32 %v3985_v27, 16  ;;  %v3992_v61 = vcombine.low %v5433_v36, %v2762_v38  ;;  %v2750_v27 = vld [vmem:[#allocation2 + $0x3c] sm:$0x8] }
 0x1fd   : > { %v1905_v32 = vor.u32 %v1903_v49, %v1902_v0  ;;  %v3852_v20 = vrot.slane %v1921_v56, 11  ;;  %v2831_v37 = vor.u32 %v2830_v18, %v2827_v63  ;;  %v3993_v55 = vcombine.low %v5438_v9, %v2763_v42  ;;  %4392 = vmatprep.subr.bf16.mxu1 %v4653_v41 }
 0x1fe   : > { %v5485_v43 = vrot.slane %v3801_v3, 5  ;;  %v5489_v22 = vcombine.high %v5465_v31, %v5465_v31  ;;  %v1931_v4 = vor.u32 %v1929_v60, %v1928_v12  ;;  %4437 = vmatpush3.bf16.msra.mxu0 %v4642_v28  ;;  %v2838_v23 = vrot.slane %v2836_v13, 5  ;;  %v4654_v3 = vld [vmem:[%s6015_s4 + $0x218] sm:$0xff]  }
 0x1ff   : > { %v5491_v30 = vrot.slane %v3992_v61, 5  ;;  %v4008_v33 = vcombine.low %v2748_v62, %v2831_v37  ;;  %v4011_v26 = vsel %vm3736_vm11, %v5433_v36, %v2831_v37  ;;  %4438 = vmatprep.subr.bf16.mxu0 %v4652_v7  ;;  %v3794_v35 = vcombine.low %v5479_v14, %v5479_v14  ;;  %v5510_v62 = vld [vmem:[#allocation2 + $0x4c] sm:$0xf]  ;;  %v5520_v13 = vld [vmem:[#allocation2 + $0x58] sm:$0xf] }
 0x200   : > { %v1906_v38 = vsel %vm5369_vm13, %v3850_v10, %v1905_v32  ;;  %v1932_v28 = vsel %vm5369_vm13, %v3852_v20, %v1931_v4  ;;  %v2839_v25 = vor.u32 %v2838_v23, %v2835_v46  ;;  %v3026_v40 = vshrl.u32 %v4011_v26, 16  ;;  %4393 = vmatpush3.bf16.msra.mxu1 %v4653_v41  ;;  %v4661_v41 = vld [vmem:[%s6015_s4 + $0x168] sm:$0xff]  }
 0x201   : > { %v3914_v36 = vcombine.high %v1906_v38, %v1932_v28  ;;  %v3913_v8 = vcombine.low %v1906_v38, %v1932_v28  ;;  %v5506_v48 = vrot.slane %v3993_v55, 5  ;;  %v3021_v49 = vshrl.u32 %v4008_v33, 16  ;;  %4394 = vmatprep.subr.bf16.mxu1 %v4657_v15  ;;  %v5524_v55 = vld [vmem:[#allocation2 + $0x58] sm:$0xf] }
 0x202   : > { %v4013_v42 = vcombine.low %v2750_v27, %v2839_v25  ;;  %v4016_v52 = vsel %vm3736_vm11, %v5438_v9, %v2839_v25  ;;  %v3028_v50 = vrot.slane %v3026_v40, 7  ;;  %v3029_v60 = vshll.u32 %v4011_v26, 16  ;;  %4439 = vmatpush3.bf16.msra.mxu0 %v4652_v7  ;;  %v4660_v9 = vld [vmem:[%s6015_s4 + $0x220] sm:$0xff]   ;;  %v4662_v25 = vld [vmem:[%s6015_s4 + $0x228] sm:$0xff]   ;;  %v4665_v40 = vld [vmem:[%s6015_s4 + $0x170] sm:$0xff]  }
 0x203   : > { %2331 = vmatprep.mubr.bf16.mxu1 %v3914_v36  ;;  %v4042_v63 = vrot.slane %v3021_v49, 11  ;;  %v3052_v0 = vshrl.u32 %v4016_v52, 16  ;;  %v3055_v56 = vshll.u32 %v4016_v52, 16  ;;  %4440 = vmatprep.subr.bf16.mxu0 %v4654_v3  ;;  %v3795_v18 = vcombine.low %v5504_v53, %v5504_v53  ;;  %v1628_v36 = vld [vmem:[#allocation2 + $0x48] sm:$0x8] }
 0x204   : > { %2332 = vmatmul.mubr.bf16.gmra.mrb[4].mxu1 %v3913_v8  ;;  %v3031_v46 = vor.u32 %v3029_v60, %v3028_v50  ;;  %v3047_v7 = vshrl.u32 %v4013_v42, 16  ;;  %v1715_v10 = vshrl.u32 %v3794_v35, 16  ;;  %v1718_v12 = vshll.u32 %v3794_v35, 16  ;;  %v1626_v35 = vld [vmem:[#allocation2 + $0x3c] sm:$0x8] }
 0x205   : > { %v3054_v61 = vrot.slane %v3052_v0, 7  ;;  %v1723_v32 = vshrl.u32 %v3795_v18, 16  ;;  %v1726_v20 = vshll.u32 %v3795_v18, 16  ;;  %4395 = vmatpush3.bf16.msra.mxu1 %v4657_v15  ;;  %v3986_v37 = vcombine.low %v5510_v62, %v5510_v62 }
 0x206   : > { %v3032_v4 = vsel %vm5369_vm13, %v4042_v63, %v3031_v46  ;;  %v4044_v23 = vrot.slane %v3047_v7, 11  ;;  %v1717_v27 = vrot.slane %v1715_v10, 4  ;;  %v1720_v33 = vrot.slane %v1718_v12, 5  ;;  %4441 = vmatpush3.bf16.msra.mxu0 %v4654_v3  ;;  %4396 = vmatprep.subr.bf16.mxu1 %v4661_v41  ;;  %v4671_v7 = vld [vmem:[%s6015_s4 + $0x178] sm:$0xff]  }
 0x207   : > { %v3057_v26 = vor.u32 %v3055_v56, %v3054_v61  ;;  %v1725_v38 = vrot.slane %v1723_v32, 4  ;;  %v1728_v28 = vrot.slane %v1726_v20, 5  ;;  %v3987_v15 = vcombine.low %v5520_v13, %v5520_v13  ;;  %4442 = vmatprep.subr.bf16.mxu0 %v4660_v9  ;;  %v5549_v20 = vld [vmem:[#allocation2 + $0x64] sm:$0xf] }
 0x208   : > { %v1721_v8 = vor.u32 %v1720_v33, %v1717_v27  ;;  %v2841_v3 = vshrl.u32 %v3986_v37, 16  ;;  %v2844_v49 = vshll.u32 %v3986_v37, 16  ;;  %v5538_v42 = vcombine.low %v5524_v55, %v5524_v55 }
 0x209   : > { %v3058_v52 = vsel %vm5369_vm13, %v4044_v23, %v3057_v26  ;;  %v1729_v50 = vor.u32 %v1728_v28, %v1725_v38  ;;  %v2849_v60 = vshrl.u32 %v3987_v15, 16  ;;  %v2852_v63 = vshll.u32 %v3987_v15, 16  ;;  %4397 = vmatpush3.bf16.msra.mxu1 %v4661_v41  ;;  %v4670_v41 = vld [vmem:[%s6015_s4 + $0x230] sm:$0xff]   ;;  %v2752_v15 = vld [vmem:[#allocation2 + $0x48] sm:$0x8] }
 0x20a   : > { %v4106_v0 = vcombine.high %v3032_v4, %v3058_v52  ;;  %v4105_v56 = vcombine.low %v3032_v4, %v3058_v52  ;;  %v3826_v18 = vcombine.low %v1626_v35, %v1721_v8  ;;  %v3829_v46 = vsel %vm3736_vm11, %v5479_v14, %v1721_v8  ;;  %4443 = vmatpush3.bf16.msra.mxu0 %v4660_v9  ;;  %v4673_v52 = vld [vmem:[%s6015_s4 + $0x40] sm:$0xff]  }
 0x20b   : > { %v3831_v10 = vcombine.low %v1628_v36, %v1729_v50  ;;  %v3834_v12 = vsel %vm3736_vm11, %v5504_v53, %v1729_v50  ;;  %v1952_v61 = vshrl.u32 %v3829_v46, 16  ;;  %v1955_v32 = vshll.u32 %v3829_v46, 16  ;;  %4444 = vmatprep.subr.bf16.mxu0 %v4662_v25  ;;  %4398 = vmatprep.subr.bf16.mxu1 %v4665_v40 }
 0x20c   : > { %3457 = vmatprep.mubr.bf16.mxu0 %v4106_v0  ;;  %v1947_v9 = vshrl.u32 %v3826_v18, 16  ;;  %v1978_v37 = vshrl.u32 %v3834_v12, 16  ;;  %v1981_v4 = vshll.u32 %v3834_v12, 16  ;;  %v2843_v23 = vrot.slane %v2841_v3, 4  ;;  %v2754_v0 = vld [vmem:[#allocation2 + $0x54] sm:$0x8] }
 0x20d   : > { %3458 = vmatmul.mubr.bf16.gmra.mrb[24].mxu0 %v4105_v56  ;;  %v1954_v27 = vrot.slane %v1952_v61, 7  ;;  %v1973_v33 = vshrl.u32 %v3831_v10, 16  ;;  %v2846_v26 = vrot.slane %v2844_v49, 5  ;;  %v2851_v35 = vrot.slane %v2849_v60, 4  ;;  %4399 = vmatpush3.bf16.msra.mxu1 %v4665_v40  ;;  %v4672_v40 = vld [vmem:[%s6015_s4 + $0x238] sm:$0xff]  }
 0x20e   : > { %v3854_v38 = vrot.slane %v1947_v9, 11  ;;  %v1980_v28 = vrot.slane %v1978_v37, 7  ;;  %v2854_v36 = vrot.slane %v2852_v63, 5  ;;  %v3797_v8 = vcombine.low %v5549_v20, %v5549_v20  ;;  %4445 = vmatpush3.bf16.msra.mxu0 %v4662_v25  ;;  %4400 = vmatprep.subr.bf16.mxu1 %v4671_v7 }
 0x20f   : > { %v1957_v3 = vor.u32 %v1955_v32, %v1954_v27  ;;  %v3856_v50 = vrot.slane %v1973_v33, 11  ;;  %v2847_v56 = vor.u32 %v2846_v26, %v2843_v23  ;;  %v1731_v49 = vshrl.u32 %v5538_v42, 16  ;;  %4446 = vmatprep.subr.bf16.mxu0 %v4670_v41  ;;  %v5572_v26 = vld [vmem:[#allocation2 + $0x64] sm:$0xf] }
 0x210   : > { %v1983_v60 = vor.u32 %v1981_v4, %v1980_v28  ;;  %v2855_v63 = vor.u32 %v2854_v36, %v2851_v35  ;;  %v1734_v25 = vshll.u32 %v5538_v42, 16  ;;  %v1739_v18 = vshrl.u32 %v3797_v8, 16 }
 0x211   : > { %v1958_v46 = vsel %vm5369_vm13, %v3854_v38, %v1957_v3  ;;  %v4018_v10 = vcombine.low %v2752_v15, %v2847_v56  ;;  %v4021_v12 = vsel %vm3736_vm11, %v5510_v62, %v2847_v56  ;;  %v1733_v61 = vrot.slane %v1731_v49, 4  ;;  %4401 = vmatpush3.bf16.msra.mxu1 %v4671_v7 }
 0x212   : > { %v1984_v32 = vsel %vm5369_vm13, %v3856_v50, %v1983_v60  ;;  %v4023_v9 = vcombine.low %v2754_v0, %v2855_v63  ;;  %v4026_v37 = vsel %vm3736_vm11, %v5520_v13, %v2855_v63  ;;  %v3078_v4 = vshrl.u32 %v4021_v12, 16  ;;  %4447 = vmatpush3.bf16.msra.mxu0 %v4670_v41  ;;  %4216 = vmatprep.subr.bf16.mxu1 %v4673_v52  ;;  %v1630_v50 = vld [vmem:[#allocation2 + $0x54] sm:$0x8] }
 0x213   : > { %v3917_v42 = vcombine.high %v1958_v46, %v1984_v32  ;;  %v3916_v23 = vcombine.low %v1958_v46, %v1984_v32  ;;  %v3073_v27 = vshrl.u32 %v4018_v10, 16  ;;  %v3081_v33 = vshll.u32 %v4021_v12, 16  ;;  %4448 = vmatprep.subr.bf16.mxu0 %v4672_v40 }
 0x214   : > { %v3080_v62 = vrot.slane %v3078_v4, 7  ;;  %v3099_v35 = vshrl.u32 %v4023_v9, 16  ;;  %v3104_v7 = vshrl.u32 %v4026_v37, 16  ;;  %v3107_v38 = vshll.u32 %v4026_v37, 16 }
 0x215   : > { %2339 = vmatprep.mubr.bf16.mxu1 %v3917_v42  ;;  %v4046_v28 = vrot.slane %v3073_v27, 11  ;;  %v1736_v15 = vrot.slane %v1734_v25, 5  ;;  %v1741_v36 = vrot.slane %v1739_v18, 4  ;;  %v1742_v3 = vshll.u32 %v3797_v8, 16  ;;  %v1632_v18 = vld [vmem:[#allocation2 + $0x60] sm:$0x8] }
 0x216   : > { %2340 = vmatmul.mubr.bf16.gmra.mrb[8].mxu1 %v3916_v23  ;;  %v3083_v13 = vor.u32 %v3081_v33, %v3080_v62  ;;  %v4048_v41 = vrot.slane %v3099_v35, 11  ;;  %v3106_v52 = vrot.slane %v3104_v7, 7  ;;  %v3988_v0 = vcombine.low %v5572_v26, %v5572_v26  ;;  %4449 = vmatpush3.bf16.msra.mxu0 %v4672_v40  ;;  %v5599_v7 = vld [vmem:[#allocation2 + $0x68] sm:$0x1] }
 0x217   : > { %v5578_v56 = vcombine.high %v5485_v43, %v5485_v43  ;;  %v5582_v49 = vcombine.high %v5491_v30, %v5491_v30  ;;  %v1737_v60 = vor.u32 %v1736_v15, %v1733_v61  ;;  %v1744_v63 = vrot.slane %v1742_v3, 5 }
 0x218   : > { %v5586_v8 = vcombine.high %v5506_v48, %v5506_v48  ;;  %v3109_v25 = vor.u32 %v3107_v38, %v3106_v52  ;;  %v2857_v46 = vshrl.u32 %v3988_v0, 16  ;;  %v1771_v40 = vrot.slane %v3799_v21, 5  ;;  %v2756_v52 = vld [vmem:[#allocation2 + $0x60] sm:$0x8] }
 0x219   : > { %v1745_v10 = vor.u32 %v1744_v63, %v1741_v36  ;;  %v3836_v12 = vcombine.low %v1630_v50, %v1737_v60  ;;  %v3839_v32 = vsel %vm3736_vm11, %v5524_v55, %v1737_v60  ;;  %v2860_v9 = vshll.u32 %v3988_v0, 16 }
 0x21a   : > { %v3084_v61 = vsel %vm5369_vm13, %v4046_v28, %v3083_v13  ;;  %v3110_v37 = vsel %vm5369_vm13, %v4048_v41, %v3109_v25  ;;  %v2004_v4 = vshrl.u32 %v3839_v32, 16  ;;  %v2859_v42 = vrot.slane %v2857_v46, 4 }
 0x21b   : > { %v4109_v23 = vcombine.high %v3084_v61, %v3110_v37  ;;  %v4108_v27 = vcombine.low %v3084_v61, %v3110_v37  ;;  %v3841_v33 = vcombine.low %v1632_v18, %v1745_v10  ;;  %v3844_v54 = vsel %vm3736_vm11, %v5549_v20, %v1745_v10 }
 0x21c   : > { %v1999_v44 = vshrl.u32 %v3836_v12, 16  ;;  %v2006_v21 = vrot.slane %v2004_v4, 7  ;;  %v2007_v62 = vshll.u32 %v3839_v32, 16  ;;  %v2030_v35 = vshrl.u32 %v3844_v54, 16 }
 0x21d   : > { %3465 = vmatprep.mubr.bf16.mxu0 %v4109_v23  ;;  %v2025_v38 = vshrl.u32 %v3841_v33, 16  ;;  %v2033_v28 = vshll.u32 %v3844_v54, 16  ;;  %v2862_v15 = vrot.slane %v2860_v9, 5  ;;  %v3812_v36 = vcombine.low %v1771_v40, %v1771_v40 }
 0x21e   : > { %3466 = vmatmul.mubr.bf16.gmra.mrb[28].mxu0 %v4108_v27  ;;  %v3858_v3 = vrot.slane %v1999_v44, 11  ;;  %v2009_v13 = vor.u32 %v2007_v62, %v2006_v21  ;;  %v2032_v41 = vrot.slane %v2030_v35, 7  ;;  %v3815_v50 = vcombine.high %v1771_v40, %v1771_v40  ;;  %v2761_v40 = vld [vmem:[#allocation2 + $0x2c] sm:$0x1] }
 0x21f   : > { %v3860_v0 = vrot.slane %v2025_v38, 11  ;;  %v2863_v60 = vor.u32 %v2862_v15, %v2859_v42  ;;  %v3996_v63 = vcombine.low %v5572_v26, %v5599_v7  ;;  %v1861_v25 = vshrl.u32 %v5398_v5, 16 }
 0x220   : > { %v2035_v18 = vor.u32 %v2033_v28, %v2032_v41  ;;  %v3847_v46 = vrot.slane %v5448_v19, 11  ;;  %v1864_v10 = vshll.u32 %v5398_v5, 16  ;;  %v1882_v12 = vshrl.u32 %v3812_v36, 16 }
 0x221   : > { %v4028_v32 = vcombine.low %v2756_v52, %v2863_v60  ;;  %v4031_v9 = vsel %vm3736_vm11, %v5572_v26, %v2863_v60  ;;  %v1863_v61 = vrot.slane %v1861_v25, 7  ;;  %v1887_v37 = vshrl.u32 %v3815_v50, 16  ;;  %v4688_v26 = vld [vmem:[%s6015_s4 + $0x70] sm:$0xff]  }
 0x222   : > { %v2010_v4 = vsel %vm5369_vm13, %v3858_v3, %v2009_v13  ;;  %v2036_v42 = vsel %vm5369_vm13, %v3860_v0, %v2035_v18  ;;  %v3130_v23 = vshrl.u32 %v4031_v9, 16  ;;  %v3133_v27 = vshll.u32 %v4031_v9, 16 }
 0x223   : > { %v3920_v33 = vcombine.high %v2010_v4, %v2036_v42  ;;  %v3125_v19 = vshrl.u32 %v4028_v32, 16  ;;  %v3919_v54 = vcombine.low %v2010_v4, %v2036_v42  ;;  %v1866_v5 = vor.u32 %v1864_v10, %v1863_v61 }
 0x224   : > { %v3132_v44 = vrot.slane %v3130_v23, 7  ;;  %v1889_v21 = vrot.slane %v1887_v37, 7  ;;  %v1890_v62 = vshll.u32 %v3815_v50, 16  ;;  %v3991_v35 = vcombine.low %v5390_v2, %v2761_v40  ;;  %v1638_v37 = vld [vmem:[#allocation2 + $0x44] sm:$0x1] }
 0x225   : > { %2347 = vmatprep.mubr.bf16.mxu1 %v3920_v33  ;;  %v4050_v38 = vrot.slane %v3125_v19, 11  ;;  %v3849_v28 = vrot.slane %v1882_v12, 11  ;;  %v2896_v15 = vrot.slane %v3990_v51, 5  ;;  %v3817_v36 = vcombine.low %v5465_v31, %v5465_v31 }
 0x226   : > { %v3135_v3 = vor.u32 %v3133_v27, %v3132_v44  ;;  %2348 = vmatmul.mubr.bf16.gmra.mrb[12].mxu1 %v3919_v54  ;;  %v1867_v13 = vsel %vm5369_vm13, %v3847_v46, %v1866_v5  ;;  %v1892_v41 = vor.u32 %v1890_v62, %v1889_v21  ;;  %v2897_v52 = vrot.slane %v3991_v35, 5  ;;  %v1639_v27 = vld [vmem:[#allocation2 + $0x50] sm:$0x1] }
 0x227   : > { %v3999_v50 = vcombine.low %v2896_v15, %v2896_v15  ;;  %v4002_v0 = vcombine.high %v2896_v15, %v2896_v15  ;;  %v1908_v2 = vshrl.u32 %v3817_v36, 16  ;;  %v1913_v60 = vshrl.u32 %v5489_v22, 16 }
 0x228   : > { %v3136_v25 = vsel %vm5369_vm13, %v4050_v38, %v3135_v3  ;;  %v1893_v57 = vsel %vm5369_vm13, %v3849_v28, %v1892_v41  ;;  %v4004_v1 = vcombine.low %v2897_v52, %v2897_v52  ;;  %v4007_v51 = vcombine.high %v2897_v52, %v2897_v52 }
 0x229   : > { %v4112_v31 = vcombine.high %v3136_v25, %v5379_v58  ;;  %v3912_v18 = vcombine.low %v1867_v13, %v1893_v57  ;;  %v2982_v10 = vshrl.u32 %v3999_v50, 16  ;;  %v3822_v46 = vcombine.low %v5485_v43, %v5485_v43 }
 0x22a   : > { %v4111_v12 = vcombine.low %v3136_v25, %v5379_v58  ;;  %v2987_v32 = vshrl.u32 %v4002_v0, 16  ;;  %v3008_v9 = vshrl.u32 %v4004_v1, 16  ;;  %v3013_v61 = vshrl.u32 %v4007_v51, 16 }
 0x22b   : > { %3473 = vmatprep.mubr.bf16.mxu0 %v4112_v31  ;;  %4402 = vmatprep.mubr.bf16.mxu1 %v3912_v18  ;;  %v4039_v40 = vrot.slane %v2982_v10, 11  ;;  %v2990_v4 = vshll.u32 %v4002_v0, 16  ;;  %v3016_v42 = vshll.u32 %v4007_v51, 16  ;;  %v1915_v23 = vrot.slane %v1913_v60, 7  ;;  %v4674_v51 = vld [vmem:[%s6015_s4] sm:$0xff]  }
 0x22c   : > { %3474 = vmatmul.mubr.bf16.gmra.mrb[32].mxu0 %v4111_v12  ;;  %v2989_v33 = vrot.slane %v2987_v32, 7  ;;  %v4041_v19 = vrot.slane %v3008_v9, 11  ;;  %v3015_v54 = vrot.slane %v3013_v61, 7  ;;  %v3851_v5 = vrot.slane %v1908_v2, 11  ;;  %v1640_v9 = vld [vmem:[#allocation2 + $0x5c] sm:$0x1] }
 0x22d   : > { %v1916_v43 = vshll.u32 %v5489_v22, 16  ;;  %v1934_v44 = vshrl.u32 %v3822_v46, 16  ;;  %v1939_v58 = vshrl.u32 %v5578_v56, 16  ;;  %v3802_v21 = vcombine.low %v5479_v14, %v1638_v37 }
 0x22e   : > { %v2992_v62 = vor.u32 %v2990_v4, %v2989_v33  ;;  %v3018_v35 = vor.u32 %v3016_v42, %v3015_v54  ;;  %v1942_v38 = vshll.u32 %v5578_v56, 16  ;;  %v3803_v28 = vcombine.low %v5504_v53, %v1639_v27  ;;  %v1641_v42 = vld [vmem:[#allocation2 + $0x68] sm:$0x1] }
 0x22f   : > { %v1918_v15 = vor.u32 %v1916_v43, %v1915_v23  ;;  %v1941_v36 = vrot.slane %v1939_v58, 7  ;;  %v1774_v3 = vrot.slane %v3802_v21, 5  ;;  %v4009_v13 = vcombine.low %v5491_v30, %v5491_v30  ;;  %v4677_v58 = vld [vmem:[%s6015_s4 + $0x8] sm:$0xff]  }
 0x230   : > { %v2993_v22 = vsel %vm5369_vm13, %v4039_v40, %v2992_v62  ;;  %v3019_v41 = vsel %vm5369_vm13, %v4041_v19, %v3018_v35  ;;  %v3853_v52 = vrot.slane %v1934_v44, 11  ;;  %v1775_v14 = vrot.slane %v3803_v28, 5  ;;  %v4678_v35 = vld [vmem:[%s6015_s4 + $0x50] sm:$0xff]  }
 0x231   : > { %v4104_v50 = vcombine.low %v2993_v22, %v3019_v41  ;;  %v1944_v0 = vor.u32 %v1942_v38, %v1941_v36  ;;  %v3827_v2 = vcombine.low %v1774_v3, %v1774_v3  ;;  %v3830_v56 = vcombine.high %v1774_v3, %v1774_v3 }
 0x232   : > { %v3832_v60 = vcombine.low %v1775_v14, %v1775_v14  ;;  %v3835_v53 = vcombine.high %v1775_v14, %v1775_v14  ;;  %v4014_v25 = vcombine.low %v5506_v48, %v5506_v48  ;;  %v3034_v57 = vshrl.u32 %v4009_v13, 16  ;;  %v4676_v48 = vld [vmem:[%s6015_s4 + $0x48] sm:$0xff]  }
 0x233   : > { %4450 = vmatprep.mubr.bf16.mxu0 %v4104_v50  ;;  %v1919_v30 = vsel %vm5369_vm13, %v3851_v5, %v1918_v15  ;;  %v1945_v1 = vsel %vm5369_vm13, %v3853_v52, %v1944_v0  ;;  %v1960_v31 = vshrl.u32 %v3827_v2, 16  ;;  %v1965_v18 = vshrl.u32 %v3830_v56, 16  ;;  %v5664_v15 = vld [vmem:[#allocation2 + $0x1c] sm:$0xf]  ;;  %v1137_v14 = vld [vmem:[#allocation2 + $0xc] sm:$0x8] }
 0x234   : > { %v3915_v10 = vcombine.low %v1919_v30, %v1945_v1  ;;  %v1968_v46 = vshll.u32 %v3830_v56, 16  ;;  %v1986_v12 = vshrl.u32 %v3832_v60, 16  ;;  %v1991_v32 = vshrl.u32 %v3835_v53, 16  ;;  %v4713_v1 = vld [vmem:[#allocation2 + $0x10] sm:$0xf] }
 0x235   : > { %v3855_v61 = vrot.slane %v1960_v31, 11  ;;  %v1967_v37 = vrot.slane %v1965_v18, 7  ;;  %v1994_v40 = vshll.u32 %v3835_v53, 16  ;;  %v3039_v4 = vshrl.u32 %v5582_v49, 16 }
 0x236   : > { %4403 = vmatmul.mubr.bf16.vlgmr.msra.gmra.mrb[16].mxu1 %v3915_v10  ;;  %v3857_v23 = vrot.slane %v1986_v12, 11  ;;  %v1993_v27 = vrot.slane %v1991_v32, 7  ;;  %v4043_v33 = vrot.slane %v3034_v57, 11  ;;  %v3060_v19 = vshrl.u32 %v4014_v25, 16  ;;  %v4682_v25 = vld [vmem:[%s6015_s4 + $0x58] sm:$0xff]  }
 0x237   : > { %4217 = vmatpush3.bf16.msra.mxu1 %v4674_v51  ;;  %v1970_v54 = vor.u32 %v1968_v46, %v1967_v37  ;;  %v3041_v5 = vrot.slane %v3039_v4, 7  ;;  %v3042_v43 = vshll.u32 %v5582_v49, 16  ;;  %v3065_v44 = vshrl.u32 %v5586_v8, 16 }
 0x238   : > { %v1996_v21 = vor.u32 %v1994_v40, %v1993_v27  ;;  %v3068_v62 = vshll.u32 %v5586_v8, 16  ;;  %4218 = vmatprep.subr.bf16.mxu1 %v4676_v48  ;;  %v3804_v38 = vcombine.low %v5524_v55, %v1640_v9  ;;  %v3805_v28 = vcombine.low %v5549_v20, %v1641_v42  ;;  %v4679_v20 = vld [vmem:[%s6015_s4 + $0x10] sm:$0xff]  }
 0x239   : > { %v3044_v49 = vor.u32 %v3042_v43, %v3041_v5  ;;  %v4045_v36 = vrot.slane %v3060_v19, 11  ;;  %v3067_v3 = vrot.slane %v3065_v44, 7  ;;  %v1213_v13 = vrot.slane %v1211_v45, 5  ;;  %v1153_v44 = vld [vmem:[#allocation2 + $0x20] sm:$0x1] }
 0x23a   : > { %v1971_v8 = vsel %vm5369_vm13, %v3855_v61, %v1970_v54  ;;  %v1997_v22 = vsel %vm5369_vm13, %v3857_v23, %v1996_v21  ;;  %v1776_v41 = vrot.slane %v3804_v38, 5  ;;  %v1777_v52 = vrot.slane %v3805_v28, 5  ;;  %v4683_v61 = vld [vmem:[%s6015_s4 + $0x18] sm:$0xff]   ;;  %v4684_v23 = vld [vmem:[%s6015_s4 + $0x60] sm:$0xff]  }
 0x23b   : > { %v3918_v55 = vcombine.low %v1971_v8, %v1997_v22  ;;  %v3070_v50 = vor.u32 %v3068_v62, %v3067_v3  ;;  %4219 = vmatpush3.bf16.msra.mxu1 %v4677_v58  ;;  %v1214_v0 = vor.u32 %v1213_v13, %v5400_v6  ;;  %v3720_v45 = vcombine.low %v5664_v15, %v5664_v15  ;;  %v4685_v38 = vld [vmem:[%s6015_s4 + $0x20] sm:$0xff]   ;;  %v4686_v13 = vld [vmem:[%s6015_s4 + $0x68] sm:$0xff]  }
 0x23c   : > { %4220 = vmatprep.subr.bf16.mxu1 %v4678_v35  ;;  %v3837_v2 = vcombine.low %v1776_v41, %v1776_v41  ;;  %v3840_v56 = vcombine.high %v1776_v41, %v1776_v41  ;;  %v3842_v60 = vcombine.low %v1777_v52, %v1777_v52  ;;  %v3845_v53 = vcombine.high %v1777_v52, %v1777_v52 }
 0x23d   : > { %4406 = vmatprep.mubr.bf16.mxu1 %v3918_v55  ;;  %v3045_v57 = vsel %vm5369_vm13, %v4043_v33, %v3044_v49  ;;  %v3071_v6 = vsel %vm5369_vm13, %v4045_v36, %v3070_v50  ;;  %v3739_v30 = vcombine.low %v1137_v14, %v1214_v0  ;;  %v3742_v51 = vsel %vm3736_vm11, %v4713_v1, %v1214_v0  ;;  %v5699_v36 = vld [vmem:[#allocation2 + $0x34] sm:$0xf]  ;;  %v1139_v55 = vld [vmem:[#allocation2 + $0x18] sm:$0x8]  ;;  %v5712_v50 = vld [vmem:[#allocation2 + $0x2c] sm:$0x1] }
 0x23e   : > { %v4107_v31 = vcombine.low %v3045_v57, %v3071_v6  ;;  %v2012_v18 = vshrl.u32 %v3837_v2, 16  ;;  %v2017_v10 = vshrl.u32 %v3840_v56, 16  ;;  %v3721_v46 = vcombine.low %v5676_v34, %v5676_v34  ;;  %v4687_v57 = vld [vmem:[%s6015_s4 + $0x28] sm:$0xff]  }
 0x23f   : > { %v2020_v12 = vshll.u32 %v3840_v56, 16  ;;  %v2038_v32 = vshrl.u32 %v3842_v60, 16  ;;  %v2043_v48 = vshrl.u32 %v3845_v53, 16  ;;  %4221 = vmatpush3.bf16.msra.mxu1 %v4679_v20  ;;  %v1388_v9 = vshrl.u32 %v3739_v30, 16  ;;  %v1141_v56 = vld [vmem:[#allocation2 + $0x24] sm:$0x8] }
 0x240   : > { %4451 = vmatmul.mubr.bf16.vlgmr.msra.gmra.mrb[36].mxu0 %v4107_v31  ;;  %v3859_v37 = vrot.slane %v2012_v18, 11  ;;  %v2019_v40 = vrot.slane %v2017_v10, 7  ;;  %v2046_v4 = vshll.u32 %v3845_v53, 16  ;;  %v1393_v42 = vshrl.u32 %v3742_v51, 16  ;;  %4222 = vmatprep.subr.bf16.mxu1 %v4682_v25 }
 0x241   : > { %v2045_v27 = vrot.slane %v2043_v48, 7  ;;  %v3776_v33 = vrot.slane %v1388_v9, 11  ;;  %v1396_v19 = vshll.u32 %v3742_v51, 16  ;;  %v1216_v54 = vshrl.u32 %v3720_v45, 16  ;;  %v5740_v51 = vld [vmem:[#allocation2 + $0x40] sm:$0xf] }
 0x242   : > { %v2022_v5 = vor.u32 %v2020_v12, %v2019_v40  ;;  %v1395_v43 = vrot.slane %v1393_v42, 7  ;;  %v1219_v58 = vshll.u32 %v3720_v45, 16  ;;  %v1224_v21 = vshrl.u32 %v3721_v46, 16 }
 0x243   : > { %v3861_v62 = vrot.slane %v2038_v32, 11  ;;  %v2048_v35 = vor.u32 %v2046_v4, %v2045_v27  ;;  %4223 = vmatpush3.bf16.msra.mxu1 %v4683_v61  ;;  %v1218_v28 = vrot.slane %v1216_v54, 4  ;;  %v1227_v49 = vshll.u32 %v3721_v46, 16  ;;  %v5746_v32 = vld [vmem:[#allocation2 + $0x4c] sm:$0xf] }
 0x244   : > { %v1398_v3 = vor.u32 %v1396_v19, %v1395_v43  ;;  %4224 = vmatprep.subr.bf16.mxu1 %v4684_v23  ;;  %v1221_v8 = vrot.slane %v1219_v58, 5  ;;  %v1226_v22 = vrot.slane %v1224_v21, 4  ;;  %v5706_v41 = vrot.slane %v1380_v39, 7  ;;  %v5753_v27 = vld [vmem:[#allocation2 + $0x58] sm:$0xf] }
 0x245   : > { %v2023_v52 = vsel %vm5369_vm13, %v3859_v37, %v2022_v5  ;;  %v2049_v14 = vsel %vm5369_vm13, %v3861_v62, %v2048_v35  ;;  %v1229_v20 = vrot.slane %v1227_v49, 5  ;;  %v3728_v0 = vcombine.low %v5664_v15, %v1153_v44 }
 0x246   : > { %v3921_v45 = vcombine.low %v2023_v52, %v2049_v14  ;;  %v5717_v2 = vsel %vm5369_vm13, %v3776_v33, %v1398_v3  ;;  %v1222_v39 = vor.u32 %v1221_v8, %v1218_v28  ;;  %v3722_v60 = vcombine.low %v5699_v36, %v5699_v36  ;;  %v4691_v3 = vld [vmem:[%s6015_s4 + $0x38] sm:$0xff]   ;;  %v4692_v14 = vld [vmem:[%s6015_s4 + $0x80] sm:$0xff]  }
 0x247   : > { %v5724_v53 = vrot.slane %v3996_v63, 5  ;;  %v3947_v25 = vcombine.high %v5383_v59, %v5717_v2  ;;  %4225 = vmatpush3.bf16.msra.mxu1 %v4685_v38  ;;  %v1230_v6 = vor.u32 %v1229_v20, %v1226_v22  ;;  %v3740_v30 = vcombine.low %v5385_v16, %v5385_v16 }
 0x248   : > { %4407 = vmatmul.mubr.bf16.gmra.mrb[20].mxu1 %v3921_v45  ;;  %4226 = vmatprep.subr.bf16.mxu1 %v4686_v13  ;;  %v3729_v7 = vcombine.low %v5676_v34, %v5712_v50  ;;  %v3744_v63 = vcombine.low %v1139_v55, %v1222_v39  ;;  %v3747_v1 = vsel %vm3736_vm11, %v5664_v15, %v1222_v39  ;;  %v1232_v31 = vshrl.u32 %v3722_v60, 16  ;;  %v4689_v15 = vld [vmem:[%s6015_s4 + $0x30] sm:$0xff]   ;;  %v1145_v50 = vld [vmem:[#allocation2 + $0x3c] sm:$0x8] }
 0x249   : > { %2645 = vmatprep.mubr.bf16.mxu1 %v3947_v25  ;;  %v5742_v18 = vrot.slane %v3728_v0, 5  ;;  %v3749_v10 = vcombine.low %v1141_v56, %v1230_v6  ;;  %v3752_v46 = vsel %vm3736_vm11, %v5676_v34, %v1230_v6  ;;  %v1419_v12 = vshrl.u32 %v3747_v1, 16  ;;  %v4690_v34 = vld [vmem:[%s6015_s4 + $0x78] sm:$0xff]   ;;  %v1143_v13 = vld [vmem:[#allocation2 + $0x30] sm:$0x8] }
 0x24a   : > { %v1414_v48 = vshrl.u32 %v3744_v63, 16  ;;  %v1422_v9 = vshll.u32 %v3747_v1, 16  ;;  %v1445_v61 = vshrl.u32 %v3752_v46, 16  ;;  %v1448_v37 = vshll.u32 %v3752_v46, 16  ;;  %v1147_v1 = vld [vmem:[#allocation2 + $0x48] sm:$0x8] }
 0x24b   : > { %4227 = vmatpush3.bf16.msra.mxu1 %v4687_v57  ;;  %v1421_v40 = vrot.slane %v1419_v12, 7  ;;  %v1440_v4 = vshrl.u32 %v3749_v10, 16  ;;  %v3723_v42 = vcombine.low %v5740_v51, %v5740_v51  ;;  %v1234_v23 = vrot.slane %v1232_v31, 4  ;;  %v4697_v10 = vld [vmem:[%s6015_s4 + $0x88] sm:$0xff]  }
 0x24c   : > { %4228 = vmatprep.subr.bf16.mxu1 %v4688_v26  ;;  %v3778_v33 = vrot.slane %v1414_v48, 11  ;;  %v1447_v19 = vrot.slane %v1445_v61, 7  ;;  %v1235_v54 = vshll.u32 %v3722_v60, 16  ;;  %v3724_v5 = vcombine.low %v5746_v32, %v5746_v32 }
 0x24d   : > { %v1424_v43 = vor.u32 %v1422_v9, %v1421_v40  ;;  %v3780_v44 = vrot.slane %v1440_v4, 11  ;;  %v1240_v58 = vshrl.u32 %v3723_v42, 16  ;;  %v1243_v21 = vshll.u32 %v3723_v42, 16 }
 0x24e   : > { %v1450_v62 = vor.u32 %v1448_v37, %v1447_v19  ;;  %v1237_v35 = vrot.slane %v1235_v54, 5  ;;  %v3725_v38 = vcombine.low %v5753_v27, %v5753_v27  ;;  %v1248_v28 = vshrl.u32 %v3724_v5, 16 }
 0x24f   : > { %v3946_v49 = vcombine.low %v5383_v59, %v5717_v2  ;;  %4229 = vmatpush3.bf16.msra.mxu1 %v4689_v15  ;;  %v1242_v8 = vrot.slane %v1240_v58, 4  ;;  %v1245_v22 = vrot.slane %v1243_v21, 5  ;;  %v1251_v52 = vshll.u32 %v3724_v5, 16  ;;  %v4698_v58 = vld [vmem:[%s6015_s4 + $0x90] sm:$0xff]  }
 0x250   : > { %4230 = vmatprep.subr.bf16.mxu1 %v4690_v34  ;;  %v5772_v55 = vsel %vm5369_vm13, %v3780_v44, %v1450_v62  ;;  %v1238_v59 = vor.u32 %v1237_v35, %v1234_v23  ;;  %v1250_v20 = vrot.slane %v1248_v28, 4  ;;  %v1256_v0 = vshrl.u32 %v3725_v38, 16  ;;  %v1149_v23 = vld [vmem:[#allocation2 + $0x54] sm:$0x8] }
 0x251   : > { %v5774_v45 = vrot.slane %v3729_v7, 5  ;;  %v5778_v2 = vsel %vm5369_vm13, %v3778_v33, %v1424_v43  ;;  %v1246_v56 = vor.u32 %v1245_v22, %v1242_v8  ;;  %v1253_v39 = vrot.slane %v1251_v52, 5 }
 0x252   : > { %v3950_v60 = vcombine.high %v5778_v2, %v5772_v55  ;;  %v3754_v25 = vcombine.low %v1143_v13, %v1238_v59  ;;  %v3757_v57 = vsel %vm3736_vm11, %v5699_v36, %v1238_v59  ;;  %v1259_v6 = vshll.u32 %v3725_v38, 16 }
 0x253   : > { %4231 = vmatpush3.bf16.msra.mxu1 %v4691_v3  ;;  %v3759_v26 = vcombine.low %v1145_v50, %v1246_v56  ;;  %v3762_v7 = vsel %vm3736_vm11, %v5740_v51, %v1246_v56  ;;  %v1471_v63 = vshrl.u32 %v3757_v57, 16  ;;  %v1258_v31 = vrot.slane %v1256_v0, 4 }
 0x254   : > { %4410 = vmatprep.subr.bf16.mxu1 %v4692_v14  ;;  %v1466_v46 = vshrl.u32 %v3754_v25, 16  ;;  %v1474_v12 = vshll.u32 %v3757_v57, 16  ;;  %v1497_v48 = vshrl.u32 %v3762_v7, 16  ;;  %v1254_v9 = vor.u32 %v1253_v39, %v1250_v20 }
 0x255   : > { %v1473_v61 = vrot.slane %v1471_v63, 7  ;;  %v1492_v37 = vshrl.u32 %v3759_v26, 16  ;;  %v1500_v15 = vshll.u32 %v3762_v7, 16  ;;  %v1261_v40 = vrot.slane %v1259_v6, 5 }
 0x256   : > { %2646 = vmatmul.mubr.bf16.vlgmr.msra.gmra.mrb[24].mxu1 %v3946_v49  ;;  %v3782_v4 = vrot.slane %v1466_v46, 11  ;;  %v1499_v42 = vrot.slane %v1497_v48, 7  ;;  %v3764_v34 = vcombine.low %v1147_v1, %v1254_v9  ;;  %v3767_v33 = vsel %vm3736_vm11, %v5746_v32, %v1254_v9  ;;  %v1155_v1 = vld [vmem:[#allocation2 + $0x38] sm:$0x1]  ;;  %v1156_v48 = vld [vmem:[#allocation2 + $0x44] sm:$0x1] }
 0x257   : > { %2653 = vmatprep.mubr.bf16.mxu1 %v3950_v60  ;;  %4411 = vmatpush3.bf16.msra.mxu1 %v4692_v14  ;;  %v1476_v19 = vor.u32 %v1474_v12, %v1473_v61  ;;  %v3784_v54 = vrot.slane %v1492_v37, 11  ;;  %v1262_v5 = vor.u32 %v1261_v40, %v1258_v31  ;;  %v1523_v43 = vshrl.u32 %v3767_v33, 16  ;;  %v1157_v9 = vld [vmem:[#allocation2 + $0x50] sm:$0x1] }
 0x258   : > { %v5793_v44 = vcombine.high %v5742_v18, %v5742_v18  ;;  %4412 = vmatprep.subr.bf16.mxu1 %v4697_v10  ;;  %v1502_v21 = vor.u32 %v1500_v15, %v1499_v42  ;;  %v1518_v62 = vshrl.u32 %v3764_v34, 16  ;;  %v3743_v35 = vcombine.high %v5385_v16, %v5385_v16  ;;  %v1158_v15 = vld [vmem:[#allocation2 + $0x5c] sm:$0x1] }
 0x259   : > { %v3769_v38 = vcombine.low %v1149_v23, %v1262_v5  ;;  %v3772_v28 = vsel %vm3736_vm11, %v5753_v27, %v1262_v5  ;;  %v1525_v49 = vrot.slane %v1523_v43, 7  ;;  %v1383_v3 = vshll.u32 %v5351_v17, 16  ;;  %v4701_v17 = vld [vmem:[%s6015_s4 + $0x98] sm:$0xff]  }
 0x25a   : > { %v3753_v13 = vcombine.high %v5774_v45, %v5774_v45  ;;  %v1503_v8 = vsel %vm5369_vm13, %v3784_v54, %v1502_v21  ;;  %v1526_v22 = vshll.u32 %v3767_v33, 16  ;;  %v1549_v52 = vshrl.u32 %v3772_v28, 16 }
 0x25b   : > { %4413 = vmatpush3.bf16.msra.mxu1 %v4697_v10  ;;  %v3949_v14 = vcombine.low %v5778_v2, %v5772_v55  ;;  %v1477_v50 = vsel %vm5369_vm13, %v3782_v4, %v1476_v19  ;;  %v3786_v59 = vrot.slane %v1518_v62, 11  ;;  %v1544_v20 = vshrl.u32 %v3769_v38, 16 }
 0x25c   : > { %4414 = vmatprep.subr.bf16.mxu1 %v4698_v58  ;;  %v1528_v0 = vor.u32 %v1526_v22, %v1525_v49  ;;  %v1551_v56 = vrot.slane %v1549_v52, 7  ;;  %v1552_v39 = vshll.u32 %v3772_v28, 16  ;;  %v1406_v60 = vshrl.u32 %v3743_v35, 16 }
 0x25d   : > { %v3953_v25 = vcombine.high %v1477_v50, %v1503_v8  ;;  %v3788_v57 = vrot.slane %v1544_v20, 11  ;;  %v1385_v6 = vor.u32 %v1383_v3, %v5706_v41  ;;  %v1401_v55 = vshrl.u32 %v3740_v30, 16  ;;  %v4702_v41 = vld [vmem:[%s6015_s4 + $0xa0] sm:$0xff]  }
 0x25e   : > { %v5820_v2 = vcombine.high %v5349_v11, %v5349_v11  ;;  %2654 = vmatmul.mubr.bf16.gmra.mrb[28].mxu1 %v3949_v14  ;;  %v1554_v26 = vor.u32 %v1552_v39, %v1551_v56  ;;  %v5824_v7 = vcombine.high %v5724_v53, %v5724_v53  ;;  %v1408_v63 = vrot.slane %v1406_v60, 7 }
 0x25f   : > { %2661 = vmatprep.mubr.bf16.mxu1 %v3953_v25  ;;  %4415 = vmatpush3.bf16.msra.mxu1 %v4698_v58  ;;  %v3745_v16 = vcombine.low %v5742_v18, %v5742_v18  ;;  %v3750_v30 = vcombine.low %v5774_v45, %v5774_v45  ;;  %v3952_v31 = vcombine.low %v1477_v50, %v1503_v8  ;;  %v1432_v46 = vshrl.u32 %v5793_v44, 16  ;;  %v4714_v50 = vld [vmem:[#allocation2 + $0x4c] sm:$0xf] }
 0x260   : > { %4416 = vmatprep.subr.bf16.mxu1 %v4701_v17  ;;  %v5835_v10 = vsel %vm5369_vm13, %v3786_v59, %v1528_v0  ;;  %v1458_v12 = vshrl.u32 %v3753_v13, 16  ;;  %v5840_v61 = vsel %vm5369_vm13, %v3788_v57, %v1554_v26  ;;  %v5846_v18 = vsel %vm5369_vm13, %v3775_v47, %v1385_v6 }
 0x261   : > { %v3777_v45 = vrot.slane %v1401_v55, 11  ;;  %v1409_v37 = vshll.u32 %v3743_v35, 16  ;;  %v1453_v40 = vshrl.u32 %v3750_v30, 16  ;;  %v1461_v42 = vshll.u32 %v3753_v13, 16  ;;  %v4708_v30 = vld [vmem:[%s6015_s4 + $0xb8] sm:$0xff]  }
 0x262   : > { %v1460_v4 = vrot.slane %v1458_v12, 7  ;;  %v3730_v23 = vcombine.low %v5699_v36, %v1155_v1  ;;  %v1427_v33 = vshrl.u32 %v3745_v16, 16  ;;  %v3731_v19 = vcombine.low %v5740_v51, %v1156_v48  ;;  %v2764_v51 = vld [vmem:[#allocation2 + $0x50] sm:$0x1] }
 0x263   : > { %4417 = vmatpush3.bf16.msra.mxu1 %v4701_v17  ;;  %v1411_v34 = vor.u32 %v1409_v37, %v1408_v63  ;;  %v3732_v54 = vcombine.low %v5746_v32, %v1157_v9  ;;  %v1434_v47 = vrot.slane %v1432_v46, 7  ;;  %v3733_v58 = vcombine.low %v5753_v27, %v1158_v15  ;;  %v2765_v63 = vld [vmem:[#allocation2 + $0x5c] sm:$0x1] }
 0x264   : > { %4418 = vmatprep.subr.bf16.mxu1 %v4702_v41  ;;  %v1463_v5 = vor.u32 %v1461_v42, %v1460_v4  ;;  %v1291_v43 = vrot.slane %v3730_v23, 5  ;;  %v3956_v36 = vcombine.high %v5835_v10, %v5840_v61  ;;  %v1435_v21 = vshll.u32 %v5793_v44, 16  ;;  %v4706_v44 = vld [vmem:[%s6015_s4 + $0xb0] sm:$0xff]  }
 0x265   : > { %v1292_v62 = vrot.slane %v3731_v19, 5  ;;  %v1293_v35 = vrot.slane %v3732_v54, 5  ;;  %v3781_v32 = vrot.slane %v1453_v40, 11  ;;  %v1294_v49 = vrot.slane %v3733_v58, 5 }
 0x266   : > { %2662 = vmatmul.mubr.bf16.gmra.mrb[32].mxu1 %v3952_v31  ;;  %v3755_v38 = vcombine.low %v1291_v43, %v1291_v43  ;;  %v3758_v28 = vcombine.high %v1291_v43, %v1291_v43  ;;  %v1412_v3 = vsel %vm5369_vm13, %v3777_v45, %v1411_v34  ;;  %v3779_v13 = vrot.slane %v1427_v33, 11 }
 0x267   : > { %2669 = vmatprep.mubr.bf16.mxu1 %v3956_v36  ;;  %4419 = vmatpush3.bf16.msra.mxu1 %v4702_v41  ;;  %v3760_v27 = vcombine.low %v1292_v62, %v1292_v62  ;;  %v3763_v8 = vcombine.high %v1292_v62, %v1292_v62  ;;  %v1437_v22 = vor.u32 %v1435_v21, %v1434_v47  ;;  %v3143_v43 = vshrl.u32 %v5824_v7, 16 }
 0x268   : > { %4420 = vmatprep.subr.bf16.mxu1 %v4705_v29  ;;  %v5865_v52 = vsel %vm5369_vm13, %v3781_v32, %v1463_v5  ;;  %v1484_v14 = vshrl.u32 %v3758_v28, 16  ;;  %v3994_v59 = vcombine.low %v4714_v50, %v2764_v51  ;;  %v1479_v20 = vshrl.u32 %v3755_v38, 16 }
 0x269   : > { %v1487_v17 = vshll.u32 %v3758_v28, 16  ;;  %v1510_v0 = vshrl.u32 %v3763_v8, 16  ;;  %v3768_v56 = vcombine.high %v1293_v35, %v1293_v35  ;;  %v1505_v60 = vshrl.u32 %v3760_v27, 16  ;;  %v4716_v28 = vld [vmem:[%s6015_s4 + $0x200] sm:$0xff]  }
 0x26a   : > { %v1486_v39 = vrot.slane %v1484_v14, 7  ;;  %v3765_v25 = vcombine.low %v1293_v35, %v1293_v35  ;;  %v3773_v57 = vcombine.high %v1294_v49, %v1294_v49  ;;  %v1513_v55 = vshll.u32 %v3763_v8, 16 }
 0x26b   : > { %4421 = vmatpush3.bf16.msra.mxu1 %v4705_v29  ;;  %v1512_v6 = vrot.slane %v1510_v0, 7  ;;  %v3770_v26 = vcombine.low %v1294_v49, %v1294_v49  ;;  %v1536_v41 = vshrl.u32 %v3768_v56, 16  ;;  %v3955_v16 = vcombine.low %v5835_v10, %v5840_v61  ;;  %v4715_v61 = vld [vmem:[#allocation2 + $0x58] sm:$0xf] }
 0x26c   : > { %4422 = vmatprep.subr.bf16.mxu1 %v4706_v44  ;;  %v1438_v1 = vsel %vm5369_vm13, %v3779_v13, %v1437_v22  ;;  %v1562_v31 = vshrl.u32 %v3773_v57, 16  ;;  %v2900_v46 = vrot.slane %v3994_v59, 5  ;;  %v3948_v12 = vcombine.low %v5846_v18, %v1412_v3 }
 0x26d   : > { %v3951_v48 = vcombine.low %v1438_v1, %v5865_v52  ;;  %v1489_v9 = vor.u32 %v1487_v17, %v1486_v39  ;;  %v1515_v45 = vor.u32 %v1513_v55, %v1512_v6  ;;  %v3783_v37 = vrot.slane %v1479_v20, 11 }
 0x26e   : > { %2670 = vmatmul.mubr.bf16.gmra.mrb[36].mxu1 %v3955_v16  ;;  %v3785_v15 = vrot.slane %v1505_v60, 11  ;;  %v5876_v10 = vshrl.u32 %v3765_v25, 16  ;;  %v3995_v40 = vcombine.low %v4715_v61, %v2765_v63  ;;  %v1538_v4 = vrot.slane %v1536_v41, 7 }
 0x26f   : > { %4423 = vmatpush3.bf16.msra.mxu1 %v4706_v44  ;;  %4426 = vmatprep.mubr.bf16.mxu1 %v3948_v12  ;;  %v1539_v42 = vshll.u32 %v3768_v56, 16  ;;  %v1557_v23 = vshrl.u32 %v3770_v26, 16  ;;  %v1565_v34 = vshll.u32 %v3773_v57, 16  ;;  %v1564_v33 = vrot.slane %v1562_v31, 7  ;;  %v4717_v56 = vld [vmem:[%s6015_s4 + $0x208] sm:$0xff]  }
 0x270   : > { %4424 = vmatprep.subr.bf16.mxu1 %v4708_v30  ;;  %v1516_v18 = vsel %vm5369_vm13, %v3785_v15, %v1515_v45  ;;  %v2901_v19 = vrot.slane %v3995_v40, 5  ;;  %v4022_v54 = vcombine.high %v2900_v46, %v2900_v46  ;;  %v1490_v29 = vsel %vm5369_vm13, %v3783_v37, %v1489_v9  ;;  %v4720_v9 = vld [vmem:[%s6015_s4 + $0x220] sm:$0xff]   ;;  %v4722_v45 = vld [vmem:[%s6015_s4 + $0x230] sm:$0xff]   ;;  %v4723_v37 = vld [vmem:[%s6015_s4 + $0x238] sm:$0xff]  }
 0x271   : > { %v4029_v47 = vcombine.low %v5724_v53, %v5724_v53  ;;  %v4034_v5 = vcombine.low %v5349_v11, %v5349_v11  ;;  %v4019_v58 = vcombine.low %v2900_v46, %v2900_v46  ;;  %v3954_v35 = vcombine.low %v1490_v29, %v1516_v18 }
 0x272   : > { %v4024_v36 = vcombine.low %v2901_v19, %v2901_v19  ;;  %v4027_v21 = vcombine.high %v2901_v19, %v2901_v19  ;;  %v3091_v62 = vshrl.u32 %v4022_v54, 16  ;;  %v1541_v51 = vor.u32 %v1539_v42, %v1538_v4 }
 0x273   : > { %4425 = vmatpush3.bf16.msra.mxu1 %v4708_v30  ;;  %v3789_v32 = vrot.slane %v1557_v23, 11  ;;  %v3138_v38 = vshrl.u32 %v4029_v47, 16  ;;  %v1567_v53 = vor.u32 %v1565_v34, %v1564_v33  ;;  %v3094_v13 = vshll.u32 %v4022_v54, 16  ;;  %v4718_v30 = vld [vmem:[%s6015_s4 + $0x210] sm:$0xff]  }
 0x274   : > { %4458 = vmatprep.subr.bf16.mxu1 %v4716_v28  ;;  %v3093_v49 = vrot.slane %v3091_v62, 7  ;;  %v3112_v3 = vshrl.u32 %v4024_v36, 16  ;;  %v3117_v11 = vshrl.u32 %v4027_v21, 16  ;;  %v3145_v27 = vrot.slane %v3143_v43, 7 }
 0x275   : > { %v3146_v8 = vshll.u32 %v5824_v7, 16  ;;  %v3164_v44 = vshrl.u32 %v4034_v5, 16  ;;  %v3086_v22 = vshrl.u32 %v4019_v58, 16  ;;  %v3120_v14 = vshll.u32 %v4027_v21, 16 }
 0x276   : > { %4427 = vmatmul.mubr.bf16.vlgmr.msra.gmra.mrb[16].mxu1 %v3951_v48  ;;  %v3119_v52 = vrot.slane %v3117_v11, 7  ;;  %v3169_v50 = vshrl.u32 %v5820_v2, 16  ;;  %v3096_v59 = vor.u32 %v3094_v13, %v3093_v49  ;;  %v4051_v20 = vrot.slane %v3138_v38, 11  ;;  %v4719_v48 = vld [vmem:[%s6015_s4 + $0x218] sm:$0xff]  }
 0x277   : > { %4430 = vmatprep.mubr.bf16.mxu1 %v3954_v35  ;;  %4466 = vmatpush3.bf16.msra.mxu1 %v4716_v28  ;;  %v3148_v17 = vor.u32 %v3146_v8, %v3145_v27  ;;  %v3172_v0 = vshll.u32 %v5820_v2, 16  ;;  %v4049_v7 = vrot.slane %v3112_v3, 11  ;;  %v4053_v60 = vrot.slane %v3164_v44, 11 }
 0x278   : > { %4459 = vmatprep.subr.bf16.mxu1 %v4717_v56  ;;  %v3122_v39 = vor.u32 %v3120_v14, %v3119_v52  ;;  %v3171_v25 = vrot.slane %v3169_v50, 7  ;;  %v3787_v57 = vrot.slane %v5876_v10, 11  ;;  %v1568_v6 = vsel %vm5369_vm13, %v3789_v32, %v1567_v53 }
 0x279   : > { %v4047_v55 = vrot.slane %v3086_v22, 11  ;;  %v3149_v2 = vsel %vm5369_vm13, %v4051_v20, %v3148_v17 }
 0x27a   : > { %v3123_v26 = vsel %vm5369_vm13, %v4049_v7, %v3122_v39  ;;  %v3174_v41 = vor.u32 %v3172_v0, %v3171_v25  ;;  %v1542_v63 = vsel %vm5369_vm13, %v3787_v57, %v1541_v51 }
 0x27b   : > { %4467 = vmatpush3.bf16.msra.mxu1 %v4717_v56  ;;  %v3957_v16 = vcombine.low %v1542_v63, %v1568_v6  ;;  %v3097_v1 = vsel %vm5369_vm13, %v4047_v55, %v3096_v59 }
 0x27c   : > { %4460 = vmatprep.subr.bf16.mxu1 %v4718_v30  ;;  %v3175_v31 = vsel %vm5369_vm13, %v4053_v60, %v3174_v41  ;;  %v4110_v46 = vcombine.low %v3097_v1, %v3123_v26 }
 0x27d   : > { %v4113_v12 = vcombine.low %v3149_v2, %v3175_v31 }
 0x27e   : > { %4431 = vmatmul.mubr.bf16.gmra.mrb[20].mxu1 %v3957_v16 }
 0x27f   : > { %4468 = vmatpush3.bf16.msra.mxu1 %v4718_v30  ;;  %4454 = vmatprep.mubr.bf16.mxu1 %v4110_v46 }
 0x280   : > { %4461 = vmatprep.subr.bf16.mxu1 %v4719_v48 }
 0x283   : > { %4469 = vmatpush3.bf16.msra.mxu1 %v4719_v48 }
 0x284   : > { %4462 = vmatprep.subr.bf16.mxu1 %v4720_v9 }
 0x287   : > { %4470 = vmatpush3.bf16.msra.mxu1 %v4720_v9 }
 0x288   : > { %4463 = vmatprep.subr.bf16.mxu1 %v4721_v24 }
 0x28b   : > { %4471 = vmatpush3.bf16.msra.mxu1 %v4721_v24 }
 0x28c   : > { %4464 = vmatprep.subr.bf16.mxu1 %v4722_v45 }
 0x28f   : > { %4472 = vmatpush3.bf16.msra.mxu1 %v4722_v45 }
 0x290   : > { %4465 = vmatprep.subr.bf16.mxu1 %v4723_v37 }
 0x293   : > { %4473 = vmatpush3.bf16.msra.mxu1 %v4723_v37 }
 0x296   : > { %4455 = vmatmul.mubr.bf16.vlgmr.msra.gmra.mrb[20].mxu1 %v4113_v12 }
 0x2c6   : > { %v4180_v15 = vpop.f32.mrb[0].mxu1 }
 0x2c7   : > { %v4181_v10 = vpop.f32.mrb[1].mxu1 }
 0x2c8   : > { %v4182_v61 = vadd.f32 %v4181_v10, %v4180_v15  ;;  %v4183_v40 = vpop.f32.mrb[2].mxu1 }
 0x2c9   : > { %v4184_v4 = vpop.f32.mrb[3].mxu1 }
 0x2ca   : > { %v4185_v42 = vadd.f32 %v4184_v4, %v4183_v40 }
 0x2cc   : > { %v4284_v23 = vpop.f32.mrb[20].mxu0 }
 0x2cd   : > { %v4285_v34 = vpop.f32.mrb[21].mxu0 }
 0x2ce   : > { %v5927_v18 = vadd.f32 %v4285_v34, %v4284_v23  ;;  %v4287_v33 = vpop.f32.mrb[22].mxu0 }
 0x2cf   : > { %v4288_v19 = vpop.f32.mrb[23].mxu0 }
 0x2d0   : > { %v5929_v54 = vadd.f32 %v4288_v19, %v4287_v33 }
 0x2d7   : > { %v4186_v29 = vpop.f32.mrb[4].mxu1 }
 0x2d8   : > { %v4187_v47 = vpop.f32.mrb[5].mxu1 }
 0x2d9   : > { %v4188_v5 = vadd.f32 %v4187_v47, %v4186_v29  ;;  %v4189_v43 = vpop.f32.mrb[6].mxu1 }
 0x2da   : > { %v4190_v58 = vpop.f32.mrb[7].mxu1 }
 0x2db   : > { %v4191_v36 = vadd.f32 %v4190_v58, %v4189_v43 }
 0x2e0   : > { %v4290_v21 = vpop.f32.mrb[24].mxu0 }
 0x2e1   : > { %v4291_v62 = vpop.f32.mrb[25].mxu0 }
 0x2e2   : > { %v5931_v35 = vadd.f32 %v4291_v62, %v4290_v21  ;;  %v4293_v51 = vpop.f32.mrb[26].mxu0 }
 0x2e3   : > { %v4294_v32 = vpop.f32.mrb[27].mxu0 }
 0x2e4   : > { %v5933_v38 = vadd.f32 %v4294_v32, %v4293_v51 }
 0x2e9   : > { %v4192_v28 = vpop.f32.mrb[8].mxu1 }
 0x2ea   : > { %v4193_v53 = vpop.f32.mrb[9].mxu1 }
 0x2eb   : > { %v4194_v49 = vadd.f32 %v4193_v53, %v4192_v28  ;;  %v4195_v3 = vpop.f32.mrb[10].mxu1 }
 0x2ec   : > { %v4196_v11 = vpop.f32.mrb[11].mxu1 }
 0x2ed   : > { %v4197_v13 = vadd.f32 %v4196_v11, %v4195_v3 }
 0x2f1   : > { %v4296_v27 = vpop.f32.mrb[28].mxu0 }
 0x2f2   : > { %v4297_v8 = vpop.f32.mrb[29].mxu0 }
 0x2f3   : > { %v4298_v44 = vadd.f32 %v4297_v8, %v4296_v27  ;;  %v4299_v22 = vpop.f32.mrb[30].mxu0 }
 0x2f4   : > { %v4300_v52 = vpop.f32.mrb[31].mxu0 }
 0x2f5   : > { %v4301_v14 = vadd.f32 %v4300_v52, %v4299_v22 }
 0x2f9   : > { %v4198_v50 = vpop.f32.mrb[12].mxu1 }
 0x2fa   : > { %v4199_v59 = vpop.f32.mrb[13].mxu1 }
 0x2fb   : > { %v4200_v20 = vadd.f32 %v4199_v59, %v4198_v50  ;;  %v4201_v17 = vpop.f32.mrb[14].mxu1  ;;  %v4138_v50 = vld [vmem:[%s6016_s5] ss:$0 sm:$0xff] }
 0x2fc   : > { %v4202_v0 = vpop.f32.mrb[15].mxu1 }
 0x2fd   : > { %v4203_v56 = vadd.f32 %v4202_v0, %v4201_v17 }
 0x2ff   : > { %v4302_v7 = vpop.f32.mrb[32].mxu0 }
 0x300   : > { %v4303_v39 = vpop.f32.mrb[33].mxu0 }
 0x301   : > { %v4304_v60 = vadd.f32 %v4303_v39, %v4302_v7  ;;  %v4305_v25 = vpop.f32.mrb[34].mxu0 }
 0x302   : > { %v4306_v57 = vpop.f32.mrb[35].mxu0 }
 0x303   : > { %v4307_v6 = vadd.f32 %v4306_v57, %v4305_v25 }
 0x313   : > { %v4452_v55 = vpop.f32.mrb[36].mxu0 }
 0x314   : > { %v3516_v26 = vpop.f32.mrb[37].mxu0 }
 0x315   : > { %v4453_v2 = vpop.f32.mrb[38].mxu0 }
 0x316   : > { %v3519_v41 = vpop.f32.mrb[39].mxu0 }
 0x329   : > { %v4232_v63 = vpop.f32.mrb[24].mxu1 }
 0x32a   : > { %v4233_v16 = vpop.f32.mrb[25].mxu1 }
 0x32b   : > { %v4234_v30 = vadd.f32 %v4233_v16, %v4232_v63  ;;  %v4235_v1 = vpop.f32.mrb[26].mxu1 }
 0x32c   : > { %v4236_v31 = vpop.f32.mrb[27].mxu1 }
 0x32d   : > { %v4237_v46 = vadd.f32 %v4236_v31, %v4235_v1  ;;  %v4478_v12 = vadd.f32 %v4234_v30, %v4182_v61 }
 0x32f   : > { %v4486_v48 = vadd.f32 %v4237_v46, %v4185_v42 }
 0x331   : > { %v4238_v9 = vpop.f32.mrb[28].mxu1 }
 0x332   : > { %v4239_v24 = vpop.f32.mrb[29].mxu1 }
 0x333   : > { %v4240_v45 = vadd.f32 %v4239_v24, %v4238_v9  ;;  %v4241_v37 = vpop.f32.mrb[30].mxu1 }
 0x334   : > { %v4242_v15 = vpop.f32.mrb[31].mxu1 }
 0x335   : > { %v4243_v10 = vadd.f32 %v4242_v15, %v4241_v37  ;;  %v4474_v40 = vadd.f32 %v4240_v45, %v4188_v5 }
 0x337   : > { %v4482_v4 = vadd.f32 %v4243_v10, %v4191_v36 }
 0x339   : > { %v4244_v23 = vpop.f32.mrb[32].mxu1 }
 0x33a   : > { %v4245_v34 = vpop.f32.mrb[33].mxu1 }
 0x33b   : > { %v4246_v33 = vadd.f32 %v4245_v34, %v4244_v23  ;;  %v4247_v19 = vpop.f32.mrb[34].mxu1 }
 0x33c   : > { %v4248_v29 = vpop.f32.mrb[35].mxu1 }
 0x33d   : > { %v4493_v47 = vadd.f32 %v4246_v33, %v4194_v49  ;;  %v4249_v43 = vadd.f32 %v4248_v29, %v4247_v19 }
 0x33f   : > { %v4499_v58 = vadd.f32 %v4249_v43, %v4197_v13  ;;  %v4494_v21 = vadd.f32 %v4493_v47, %v4298_v44 }
 0x341   : > { %v4250_v62 = vpop.f32.mrb[36].mxu1  ;;  %v4500_v61 = vadd.f32 %v4499_v58, %v4301_v14 }
 0x342   : > { %v4251_v42 = vpop.f32.mrb[37].mxu1 }
 0x343   : > { %v4252_v51 = vadd.f32 %v4251_v42, %v4250_v62  ;;  %v4253_v32 = vpop.f32.mrb[38].mxu1 }
 0x344   : > { %v4254_v28 = vpop.f32.mrb[39].mxu1 }
 0x345   : > { %v4490_v53 = vadd.f32 %v4252_v51, %v4200_v20  ;;  %v4255_v3 = vadd.f32 %v4254_v28, %v4253_v32 }
 0x347   : > { %v4496_v5 = vadd.f32 %v4255_v3, %v4203_v56  ;;  %v4491_v36 = vadd.f32 %v4490_v53, %v4304_v60  ;;  %v4139_v56 = vld [vmem:[%s6017_s6] ss:$0 sm:$0xff] }
 0x349   : > { %v4428_v11 = vpop.f32.mrb[16].mxu1  ;;  %v4497_v27 = vadd.f32 %v4496_v5, %v4307_v6 }
 0x34a   : > { %v4475_v8 = vadd.f32 %v4474_v40, %v4428_v11  ;;  %v2712_v22 = vpop.f32.mrb[17].mxu1 }
 0x34b   : > { %v4479_v49 = vadd.f32 %v4478_v12, %v2712_v22  ;;  %v4429_v52 = vpop.f32.mrb[18].mxu1 }
 0x34c   : > { %v4476_v13 = vadd.f32 %v4475_v8, %v5931_v35  ;;  %v4483_v44 = vadd.f32 %v4482_v4, %v4429_v52  ;;  %v2715_v14 = vpop.f32.mrb[19].mxu1 }
 0x34d   : > { %v4480_v59 = vadd.f32 %v4479_v49, %v5927_v18  ;;  %v4487_v20 = vadd.f32 %v4486_v48, %v2715_v14 }
 0x34e   : > { %v4477_v17 = vadd.f32 %v4476_v13, %v4452_v55  ;;  %v4484_v0 = vadd.f32 %v4483_v44, %v5933_v38 }
 0x34f   : > { %v4481_v7 = vadd.f32 %v4480_v59, %v3516_v26  ;;  %v4488_v35 = vadd.f32 %v4487_v20, %v5929_v54 }
 0x350   : > { %v3564_v39 = vmul.f32 %v4477_v17, %v4138_v50  ;;  %v4485_v60 = vadd.f32 %v4484_v0, %v4453_v2 }
 0x351   : > { %v3562_v25 = vmul.f32 %v4481_v7, %v4138_v50  ;;  %v4489_v57 = vadd.f32 %v4488_v35, %v3519_v41 }
 0x352   : > { %v3579_v6 = vadd.f32 %v4139_v56, %v3564_v39  ;;  %v3565_v63 = vmul.f32 %v4485_v60, %v4138_v50 }
 0x353   : > { %v3577_v18 = vadd.f32 %v4139_v56, %v3562_v25  ;;  %v3563_v16 = vmul.f32 %v4489_v57, %v4138_v50 }
 0x354   : > { %v3587_v55 = vmax.f32 %v3579_v6, 0.0  ;;  %v3580_v30 = vadd.f32 %v4139_v56, %v3565_v63 }
 0x355   : > { %v3585_v38 = vmax.f32 %v3577_v18, 0.0  ;;  %v3578_v1 = vadd.f32 %v4139_v56, %v3563_v16 }
 0x356   : > { %3595 = vst [vmem:[%s5948_s13 + $0x10] sm:$0xff] %v3587_v55  ;;  %v3588_v54 = vmax.f32 %v3580_v30, 0.0 }
 0x357   : > { %3593 = vst [vmem:[%s5948_s13] sm:$0xff] %v3585_v38  ;;  %v3586_v26 = vmax.f32 %v3578_v1, 0.0 }
 0x358   : > { %3596 = vst [vmem:[%s5948_s13 + $0x18] sm:$0xff] %v3588_v54 }
 0x359   : > { %3594 = vst [vmem:[%s5948_s13 + $0x8] sm:$0xff] %v3586_v26 }
 0x369   : > { %v4456_v2 = vpop.f32.mrb[20].mxu1 }
 0x36a   : > { %v4492_v41 = vadd.f32 %v4491_v36, %v4456_v2  ;;  %v3532_v31 = vpop.f32.mrb[21].mxu1 }
 0x36b   : > { %v4495_v46 = vadd.f32 %v4494_v21, %v3532_v31  ;;  %v4457_v12 = vpop.f32.mrb[22].mxu1 }
 0x36c   : > { %v3568_v48 = vmul.f32 %v4492_v41, %v4138_v50  ;;  %v4498_v9 = vadd.f32 %v4497_v27, %v4457_v12  ;;  %v3535_v24 = vpop.f32.mrb[23].mxu1 }
 0x36d   : > { %v3566_v45 = vmul.f32 %v4495_v46, %v4138_v50  ;;  %v4501_v37 = vadd.f32 %v4500_v61, %v3535_v24 }
 0x36e   : > { %v3583_v15 = vadd.f32 %v4139_v56, %v3568_v48  ;;  %v3569_v10 = vmul.f32 %v4498_v9, %v4138_v50 }
 0x36f   : > { %v3581_v40 = vadd.f32 %v4139_v56, %v3566_v45  ;;  %v3567_v4 = vmul.f32 %v4501_v37, %v4138_v50 }
 0x370   : > { %v3591_v23 = vmax.f32 %v3583_v15, 0.0  ;;  %v3584_v34 = vadd.f32 %v4139_v56, %v3569_v10 }
 0x371   : > { %v3589_v33 = vmax.f32 %v3581_v40, 0.0  ;;  %v3582_v19 = vadd.f32 %v4139_v56, %v3567_v4 }
 0x372   : > { %3599 = vst [vmem:[%s5948_s13 + $0x30] sm:$0xff] %v3591_v23  ;;  %v3592_v29 = vmax.f32 %v3584_v34, 0.0 }
 0x373   : > { %3597 = vst [vmem:[%s5948_s13 + $0x20] sm:$0xff] %v3589_v33  ;;  %v3590_v47 = vmax.f32 %v3582_v19, 0.0 }
 0x374   : > { %3600 = vst [vmem:[%s5948_s13 + $0x38] sm:$0xff] %v3592_v29 }
 0x375   : > { %3598 = vst [vmem:[%s5948_s13 + $0x28] sm:$0xff] %v3590_v47 }
 0x376   : > { %4737 = shalt.err (!%p4734_p3)
}
 0x377   : > { %s4738_s21 = scalar_lea.hbm %s5960_s19, 1024  ;;  %s4742_s13 = scalar_lea.hbm %s6018_s7, 2048 }
 0x378   : > { %p4739_p4 = scmp.ne.s32.totalorder %s5960_s19, %s4738_s21  ;;  %p4743_p9 = scmp.lt.u32.totalorder %s5960_s19, %s6018_s7 }
 0x379   : > { %p4744_p10 = scmp.lt.u32.totalorder %s4742_s13, %s4738_s21  ;;  %p4746_p12 = scmp.lt.u32.totalorder %s4738_s21, %s5960_s19 }
 0x37a   : > { %p4740_p7 = pnand %p4739_p4, %p4873_p5 }
 0x37b   : > { %p4745_p11 = por %p4744_p10, %p4743_p9 }
 0x37c   : > { %p4741_p8 = pneg %p4740_p7 }
 0x37d   : > { %p4747_p13 = por %p4746_p12, %p4745_p11 }
 0x37f   : > { %p4748_p0 = pnand %p4747_p13, %p4741_p8 }
 0x381   : > { %4751 = shalt.err (!%p4748_p0)
}
 0x382   : > { %s4794_s17 = smov 128  }
 0x383   : > { %4555 = dma.vmem_to_hbm [thread:$0]  (%p4873_p5), %s5963_s15, 1024, %s5960_s19, %s5969_s28, %s4794_s17, %s4794_s17, %s4790_s18  }
 0x384 PF: > { %p4561_p1 = scmp.ge.s32.totalorder %s4786_s27, 2  ;;  %s3630_s20 = sand.u32 1, %s4774_s24  }
 0x385   : > { %s3631_s22 = scalar_lea.sflag [#allocation4], %s3630_s20 }
 0x386   : > { %p4558_p2 = pnand %p4561_p1, %p4877_p6 }
 0x388   : > { %4769 = dma.done.wait (!%p4558_p2), %s3631_s22, 1024  }
 0x389   : > { %4771 = vsyncadd (!%p4558_p2), %s3631_s22, 4294966272  ;;  %p17_p3 = scmp.ge.s32.totalorder %s4860_s30, 4   ;;  %s6027_s24 = smov %s4778_s25 }
 0x38a   : > { %s6028_s25 = smov %s4782_s26  ;;  %s6029_s26 = smov %s4871_s10 }
 0x38b   : > { %s6030_s27 = smov %s4860_s30  ;;  %19 = sbr.rel (!%p17_p3) target bundleno = 3 (0x3), region = 89 }
 0x392   :  { %3636 = vsyncpa [#allocation4], 1 }
 0x393   :  { %3638 = vsyncpa [#allocation4 + $0x1], 1 }

</bundles_post_ra>
